<compile_context>
chip_gen: v7x
topology: tpu7x:2x2x1
jax: 0.10.0
libtpu: 0.0.40
codegen_flags: <defaults>
</compile_context>

<pallas_src>
import math

import jax
import jax.numpy as jnp
from jax.experimental import pallas as pl
from jax.experimental.pallas import tpu as pltpu

# ---- synthetic model config (small, consistent with a decoder forward) ----
B, S, H = 2, 8, 32          # batch, seq, hidden
NH, HD = 4, 8               # heads, head dim (NH * HD == H)
F = 64                      # MLP intermediate size
L_TOTAL = 4                 # total layers in the wrapped model
START_LAYER, END_LAYER = 1, 3
N_APPLY = END_LAYER - START_LAYER   # == number of layers actually applied
EPS = 1e-6
NEG_INF = -1e30
DALL = NH * HD              # fused per-head width (== H here)


def _rmsnorm(x, w):
    var = jnp.mean(x * x, axis=-1, keepdims=True)
    return x * jax.lax.rsqrt(var + EPS) * w


def decoder_stack_kernel(h_ref, wqkv_ref, wo_ref, wgu_ref, wd_ref,
                         ln1_ref, ln2_ref, out_ref):
    x = h_ref[...]                                     # (B*S, H), resident
    scale = 1.0 / math.sqrt(HD)

    # Causal mask: built ONCE per kernel invocation (hoisted out of layer loop).
    q_idx = jax.lax.broadcasted_iota(jnp.int32, (S, S), 0)
    k_idx = jax.lax.broadcasted_iota(jnp.int32, (S, S), 1)
    mask = jnp.where(q_idx >= k_idx, 0.0, NEG_INF)     # (S, S)

    def to_heads(t):
        # (B*S, NH*HD) -> (NH*B, S, HD): head-major batching via lane slices
        # + leading-dim concat (avoids an in-kernel 4-D transpose).
        parts = [t[:, hi * HD:(hi + 1) * HD].reshape(1, B * S, HD)
                 for hi in range(NH)]
        return jnp.concatenate(parts, axis=0).reshape(NH * B, S, HD)

    # Static unroll over the sliced layer range (weights fully VMEM-resident).
    for li in range(N_APPLY):
        ln1 = ln1_ref[li]                              # (1, H)
        ln2 = ln2_ref[li]                              # (1, H)

        # ------------- self attention (causal, all heads fused) -------------
        xn = _rmsnorm(x, ln1)                          # (B*S, H)
        qkv = jnp.dot(xn, wqkv_ref[li],
                      preferred_element_type=jnp.float32)   # (B*S, 3*NH*HD)
        qh = to_heads(qkv[:, 0 * DALL:1 * DALL])       # (NH*B, S, HD)
        kh = to_heads(qkv[:, 1 * DALL:2 * DALL])
        vh = to_heads(qkv[:, 2 * DALL:3 * DALL])

        s = jnp.einsum('nqd,nkd->nqk', qh, kh,
                       preferred_element_type=jnp.float32) * scale
        s = s + mask[None]                             # (NH*B, S, S)
        m = jnp.max(s, axis=-1, keepdims=True)
        p = jnp.exp(s - m)
        denom = jnp.sum(p, axis=-1, keepdims=True)
        p = p * pl.reciprocal(denom, approx=True)      # EUP, not VPU divide
        ctx = jnp.einsum('nqk,nkd->nqd', p, vh,
                         preferred_element_type=jnp.float32)  # (NH*B, S, HD)

        # Re-assemble (B*S, NH*HD) and do ONE output projection over all heads.
        ctx = ctx.reshape(NH, B * S, HD)
        ctx2 = jnp.concatenate([ctx[hi] for hi in range(NH)], axis=-1)
        x = x + jnp.dot(ctx2, wo_ref[li],
                        preferred_element_type=jnp.float32)   # (B*S, H)

        # ------------------ SwiGLU MLP (fused gate/up) -----------------------
        xn2 = _rmsnorm(x, ln2)
        gu = jnp.dot(xn2, wgu_ref[li],
                     preferred_element_type=jnp.float32)      # (B*S, 2F)
        g = gu[:, :F]
        u = gu[:, F:]
        x = x + jnp.dot(g * jax.nn.sigmoid(g) * u, wd_ref[li],
                        preferred_element_type=jnp.float32)

    out_ref[...] = x


def sliced_model_forward(h, params):
    """Equivalent of SlicedModel.forward(h): apply layers
    [START_LAYER, START_LAYER + N_APPLY) and return the hidden state."""
    wq, wk, wv, wo, wg, wu, wd, ln1, ln2 = params
    if N_APPLY == 0:
        return h

    sl = slice(START_LAYER, START_LAYER + N_APPLY)

    # Host-side weight fusion (layout plumbing, done once per forward):
    #   wq/wk/wv (L,NH,H,HD) -> per-layer (H, NH*HD), concat -> (H, 3*NH*HD)
    def fuse_heads(w):
        w = jnp.transpose(w[sl], (0, 2, 1, 3))          # (N_APPLY, H, NH, HD)
        return w.reshape(N_APPLY, H, NH * HD)

    wqkv = jnp.concatenate([fuse_heads(wq), fuse_heads(wk), fuse_heads(wv)],
                           axis=-1)                     # (N_APPLY, H, 3*NH*HD)
    wo_f = wo[sl].reshape(N_APPLY, NH * HD, H)          # heads stacked on rows
    wgu = jnp.concatenate([wg[sl], wu[sl]], axis=-1)    # (N_APPLY, H, 2F)
    wd_s = wd[sl]                                       # (N_APPLY, F, H)
    ln1_s = ln1[sl]                                     # (N_APPLY, 1, H)
    ln2_s = ln2[sl]

    h2 = h.reshape(B * S, H)                            # 2-D residual layout

    vspec = pl.BlockSpec(memory_space=pltpu.MemorySpace.VMEM)
    out2 = pl.pallas_call(
        decoder_stack_kernel,
        out_shape=jax.ShapeDtypeStruct((B * S, H), jnp.float32),
        in_specs=[vspec] * 7,
        out_specs=vspec,
    )(h2, wqkv, wo_f, wgu, wd_s, ln1_s, ln2_s)
    return out2.reshape(B, S, H)


def reference_forward(h, params):
    """Pure-JAX reference with the original (unfused) per-head math."""
    wq, wk, wv, wo, wg, wu, wd, ln1, ln2 = params
    x = h
    scale = 1.0 / math.sqrt(HD)
    q_idx = jax.lax.broadcasted_iota(jnp.int32, (S, S), 0)
    k_idx = jax.lax.broadcasted_iota(jnp.int32, (S, S), 1)
    mask = jnp.where(q_idx >= k_idx, 0.0, NEG_INF)
    for layer in range(START_LAYER, START_LAYER + N_APPLY):
        xn = _rmsnorm(x, ln1[layer, 0])
        attn_out = jnp.zeros((B, S, H), jnp.float32)
        for hi in range(NH):
            qh = jnp.einsum('bsh,hd->bsd', xn, wq[layer, hi])
            kh = jnp.einsum('bsh,hd->bsd', xn, wk[layer, hi])
            vh = jnp.einsum('bsh,hd->bsd', xn, wv[layer, hi])
            s = jnp.einsum('bqd,bkd->bqk', qh, kh) * scale + mask[None]
            p = jax.nn.softmax(s, axis=-1)
            ctx = jnp.einsum('bqk,bkd->bqd', p, vh)
            attn_out = attn_out + jnp.einsum('bsd,dh->bsh', ctx, wo[layer, hi])
        x = x + attn_out
        xn2 = _rmsnorm(x, ln2[layer, 0])
        g = jnp.einsum('bsh,hf->bsf', xn2, wg[layer])
        u = jnp.einsum('bsh,hf->bsf', xn2, wu[layer])
        a = g * jax.nn.sigmoid(g) * u
        x = x + jnp.einsum('bsf,fh->bsh', a, wd[layer])
    return x


if __name__ == "__main__":
    key = jax.random.PRNGKey(0)
    ks = jax.random.split(key, 8)
    init = 0.05
    wq = jax.random.normal(ks[0], (L_TOTAL, NH, H, HD), jnp.float32) * init
    wk = jax.random.normal(ks[1], (L_TOTAL, NH, H, HD), jnp.float32) * init
    wv = jax.random.normal(ks[2], (L_TOTAL, NH, H, HD), jnp.float32) * init
    wo = jax.random.normal(ks[3], (L_TOTAL, NH, HD, H), jnp.float32) * init
    wg = jax.random.normal(ks[4], (L_TOTAL, H, F), jnp.float32) * init
    wu = jax.random.normal(ks[5], (L_TOTAL, H, F), jnp.float32) * init
    wd = jax.random.normal(ks[6], (L_TOTAL, F, H), jnp.float32) * init
    ln1 = jnp.ones((L_TOTAL, 1, H), jnp.float32)
    ln2 = jnp.ones((L_TOTAL, 1, H), jnp.float32)
    params = (wq, wk, wv, wo, wg, wu, wd, ln1, ln2)

    h = jax.random.normal(ks[7], (B, S, H), jnp.float32)   # inputs_embeds

    out = sliced_model_forward(h, params)
    out = jax.block_until_ready(out)

    ref = reference_forward(h, params)
    assert out.shape == (B, S, H) and out.dtype == jnp.float32
    max_err = float(jnp.max(jnp.abs(out - ref)))
    # Tolerance loosened slightly vs. the exact-divide version because the
    # softmax normalization uses the EUP approximate reciprocal.
    assert max_err < 2e-3, f"mismatch vs reference: {max_err}"

    print("KERNEL_OK")
</pallas_src>

<mosaic_0001>
module attributes {stable_mosaic.version = 11 : i64} {
  func.func @decoder_stack_kernel(%arg0: memref<16x32xf32, #tpu.memory_space<vmem>>, %arg1: memref<2x32x96xf32, #tpu.memory_space<vmem>>, %arg2: memref<2x32x32xf32, #tpu.memory_space<vmem>>, %arg3: memref<2x32x128xf32, #tpu.memory_space<vmem>>, %arg4: memref<2x64x32xf32, #tpu.memory_space<vmem>>, %arg5: memref<2x1x32xf32, #tpu.memory_space<vmem>>, %arg6: memref<2x1x32xf32, #tpu.memory_space<vmem>>, %arg7: memref<16x32xf32, #tpu.memory_space<vmem>>) attributes {dimension_semantics = [], scalar_prefetch = 0 : i64, scratch_operands = 0 : i64, tpu.core_type = #tpu.core_type<tc>} {
    %c0 = arith.constant 0 : index
    %c0_0 = arith.constant 0 : index
    %0 = vector.load %arg0[%c0, %c0_0] : memref<16x32xf32, #tpu.memory_space<vmem>>, vector<16x32xf32>
    %1 = tpu.iota {dimensions = array<i32: 0>} : vector<8x8xi32>
    %2 = tpu.iota {dimensions = array<i32: 1>} : vector<8x8xi32>
    %3 = arith.cmpi sge, %1, %2 : vector<8x8xi32>
    %cst = arith.constant 0.000000e+00 : f32
    %cst_1 = arith.constant -1.000000e+30 : f32
    %4 = vector.broadcast %cst : f32 to vector<8x8xf32>
    %5 = vector.broadcast %cst_1 : f32 to vector<8x8xf32>
    %6 = arith.select %3, %4, %5 : vector<8x8xi1>, vector<8x8xf32>
    %c0_2 = arith.constant 0 : index
    %c0_3 = arith.constant 0 : index
    %c0_4 = arith.constant 0 : index
    %7 = vector.load %arg5[%c0_2, %c0_3, %c0_4] : memref<2x1x32xf32, #tpu.memory_space<vmem>>, vector<1x1x32xf32>
    %8 = vector.shape_cast %7 : vector<1x1x32xf32> to vector<1x32xf32>
    %c0_5 = arith.constant 0 : index
    %c0_6 = arith.constant 0 : index
    %c0_7 = arith.constant 0 : index
    %9 = vector.load %arg6[%c0_5, %c0_6, %c0_7] : memref<2x1x32xf32, #tpu.memory_space<vmem>>, vector<1x1x32xf32>
    %10 = vector.shape_cast %9 : vector<1x1x32xf32> to vector<1x32xf32>
    %11 = arith.mulf %0, %0 : vector<16x32xf32>
    %cst_8 = arith.constant dense<0.000000e+00> : vector<16xf32>
    %12 = vector.multi_reduction <add>, %11, %cst_8 [1] : vector<16x32xf32> to vector<16xf32>
    %13 = vector.shape_cast %12 : vector<16xf32> to vector<16x1xf32>
    %cst_9 = arith.constant 3.200000e+01 : f32
    %14 = vector.broadcast %cst_9 : f32 to vector<16x1xf32>
    %15 = arith.divf %13, %14 : vector<16x1xf32>
    %cst_10 = arith.constant 9.99999997E-7 : f32
    %16 = vector.broadcast %cst_10 : f32 to vector<16x1xf32>
    %17 = arith.addf %15, %16 : vector<16x1xf32>
    %18 = math.rsqrt %17 : vector<16x1xf32>
    %19 = vector.broadcast %18 : vector<16x1xf32> to vector<16x32xf32>
    %20 = arith.mulf %0, %19 : vector<16x32xf32>
    %21 = vector.broadcast %8 : vector<1x32xf32> to vector<16x32xf32>
    %22 = arith.mulf %20, %21 : vector<16x32xf32>
    %c0_11 = arith.constant 0 : index
    %c0_12 = arith.constant 0 : index
    %c0_13 = arith.constant 0 : index
    %23 = vector.load %arg1[%c0_11, %c0_12, %c0_13] : memref<2x32x96xf32, #tpu.memory_space<vmem>>, vector<1x32x96xf32>
    %24 = vector.shape_cast %23 : vector<1x32x96xf32> to vector<32x96xf32>
    %cst_14 = arith.constant dense<0.000000e+00> : vector<16x96xf32>
    %25 = tpu.matmul %22, %24, %cst_14 {dimension_numbers = #tpu.dot_dimension_numbers<[1], [0], [0], [1], [0, 0, 1, 1], [], []>} : vector<16x32xf32>, vector<32x96xf32>, vector<16x96xf32> -> vector<16x96xf32>
    %26 = vector.extract_strided_slice %25 {offsets = [0, 0], sizes = [16, 32], strides = [1, 1]} : vector<16x96xf32> to vector<16x32xf32>
    %27 = vector.extract_strided_slice %26 {offsets = [0, 0], sizes = [16, 8], strides = [1, 1]} : vector<16x32xf32> to vector<16x8xf32>
    %28 = vector.shape_cast %27 : vector<16x8xf32> to vector<1x16x8xf32>
    %29 = vector.extract_strided_slice %26 {offsets = [0, 8], sizes = [16, 8], strides = [1, 1]} : vector<16x32xf32> to vector<16x8xf32>
    %30 = vector.shape_cast %29 : vector<16x8xf32> to vector<1x16x8xf32>
    %31 = vector.extract_strided_slice %26 {offsets = [0, 16], sizes = [16, 8], strides = [1, 1]} : vector<16x32xf32> to vector<16x8xf32>
    %32 = vector.shape_cast %31 : vector<16x8xf32> to vector<1x16x8xf32>
    %33 = vector.extract_strided_slice %26 {offsets = [0, 24], sizes = [16, 8], strides = [1, 1]} : vector<16x32xf32> to vector<16x8xf32>
    %34 = vector.shape_cast %33 : vector<16x8xf32> to vector<1x16x8xf32>
    %35 = tpu.concatenate %28, %30, %32, %34 in 0 : vector<1x16x8xf32>, vector<1x16x8xf32>, vector<1x16x8xf32>, vector<1x16x8xf32> -> vector<4x16x8xf32>
    %36 = vector.shape_cast %35 : vector<4x16x8xf32> to vector<8x8x8xf32>
    %37 = vector.extract_strided_slice %25 {offsets = [0, 32], sizes = [16, 32], strides = [1, 1]} : vector<16x96xf32> to vector<16x32xf32>
    %38 = vector.extract_strided_slice %37 {offsets = [0, 0], sizes = [16, 8], strides = [1, 1]} : vector<16x32xf32> to vector<16x8xf32>
    %39 = vector.shape_cast %38 : vector<16x8xf32> to vector<1x16x8xf32>
    %40 = vector.extract_strided_slice %37 {offsets = [0, 8], sizes = [16, 8], strides = [1, 1]} : vector<16x32xf32> to vector<16x8xf32>
    %41 = vector.shape_cast %40 : vector<16x8xf32> to vector<1x16x8xf32>
    %42 = vector.extract_strided_slice %37 {offsets = [0, 16], sizes = [16, 8], strides = [1, 1]} : vector<16x32xf32> to vector<16x8xf32>
    %43 = vector.shape_cast %42 : vector<16x8xf32> to vector<1x16x8xf32>
    %44 = vector.extract_strided_slice %37 {offsets = [0, 24], sizes = [16, 8], strides = [1, 1]} : vector<16x32xf32> to vector<16x8xf32>
    %45 = vector.shape_cast %44 : vector<16x8xf32> to vector<1x16x8xf32>
    %46 = tpu.concatenate %39, %41, %43, %45 in 0 : vector<1x16x8xf32>, vector<1x16x8xf32>, vector<1x16x8xf32>, vector<1x16x8xf32> -> vector<4x16x8xf32>
    %47 = vector.shape_cast %46 : vector<4x16x8xf32> to vector<8x8x8xf32>
    %48 = vector.extract_strided_slice %25 {offsets = [0, 64], sizes = [16, 32], strides = [1, 1]} : vector<16x96xf32> to vector<16x32xf32>
    %49 = vector.extract_strided_slice %48 {offsets = [0, 0], sizes = [16, 8], strides = [1, 1]} : vector<16x32xf32> to vector<16x8xf32>
    %50 = vector.shape_cast %49 : vector<16x8xf32> to vector<1x16x8xf32>
    %51 = vector.extract_strided_slice %48 {offsets = [0, 8], sizes = [16, 8], strides = [1, 1]} : vector<16x32xf32> to vector<16x8xf32>
    %52 = vector.shape_cast %51 : vector<16x8xf32> to vector<1x16x8xf32>
    %53 = vector.extract_strided_slice %48 {offsets = [0, 16], sizes = [16, 8], strides = [1, 1]} : vector<16x32xf32> to vector<16x8xf32>
    %54 = vector.shape_cast %53 : vector<16x8xf32> to vector<1x16x8xf32>
    %55 = vector.extract_strided_slice %48 {offsets = [0, 24], sizes = [16, 8], strides = [1, 1]} : vector<16x32xf32> to vector<16x8xf32>
    %56 = vector.shape_cast %55 : vector<16x8xf32> to vector<1x16x8xf32>
    %57 = tpu.concatenate %50, %52, %54, %56 in 0 : vector<1x16x8xf32>, vector<1x16x8xf32>, vector<1x16x8xf32>, vector<1x16x8xf32> -> vector<4x16x8xf32>
    %58 = vector.shape_cast %57 : vector<4x16x8xf32> to vector<8x8x8xf32>
    "tpu.trace_start"() <{level = 10 : i32, message = "nqd,nkd->nqk"}> : () -> ()
    %cst_15 = arith.constant dense<0.000000e+00> : vector<8x8x8xf32>
    %59 = tpu.matmul %36, %47, %cst_15 {dimension_numbers = #tpu.dot_dimension_numbers<[2], [2], [1], [1], [0, 0, 0, 1, 1, 1], [0], [0]>} : vector<8x8x8xf32>, vector<8x8x8xf32>, vector<8x8x8xf32> -> vector<8x8x8xf32>
    "tpu.trace_stop"() : () -> ()
    %cst_16 = arith.constant 0.353553385 : f32
    %60 = vector.broadcast %cst_16 : f32 to vector<8x8x8xf32>
    %61 = arith.mulf %59, %60 : vector<8x8x8xf32>
    %62 = vector.shape_cast %6 : vector<8x8xf32> to vector<1x8x8xf32>
    %63 = vector.broadcast %62 : vector<1x8x8xf32> to vector<8x8x8xf32>
    %64 = arith.addf %61, %63 : vector<8x8x8xf32>
    %cst_17 = arith.constant dense<0xFF800000> : vector<8x8xf32>
    %65 = vector.multi_reduction <maximumf>, %64, %cst_17 [2] : vector<8x8x8xf32> to vector<8x8xf32>
    %66 = vector.shape_cast %65 : vector<8x8xf32> to vector<8x8x1xf32>
    %67 = vector.broadcast %66 : vector<8x8x1xf32> to vector<8x8x8xf32>
    %68 = arith.subf %64, %67 : vector<8x8x8xf32>
    %69 = math.exp %68 : vector<8x8x8xf32>
    %cst_18 = arith.constant dense<0.000000e+00> : vector<8x8xf32>
    %70 = vector.multi_reduction <add>, %69, %cst_18 [2] : vector<8x8x8xf32> to vector<8x8xf32>
    %71 = vector.shape_cast %70 : vector<8x8xf32> to vector<8x8x1xf32>
    %72 = tpu.reciprocal %71 {approx = true} : vector<8x8x1xf32> -> vector<8x8x1xf32>
    %73 = vector.broadcast %72 : vector<8x8x1xf32> to vector<8x8x8xf32>
    %74 = arith.mulf %69, %73 : vector<8x8x8xf32>
    "tpu.trace_start"() <{level = 10 : i32, message = "nqk,nkd->nqd"}> : () -> ()
    %cst_19 = arith.constant dense<0.000000e+00> : vector<8x8x8xf32>
    %75 = tpu.matmul %74, %58, %cst_19 {dimension_numbers = #tpu.dot_dimension_numbers<[2], [1], [1], [2], [0, 0, 0, 1, 1, 2], [0], [0]>} : vector<8x8x8xf32>, vector<8x8x8xf32>, vector<8x8x8xf32> -> vector<8x8x8xf32>
    "tpu.trace_stop"() : () -> ()
    %76 = vector.shape_cast %75 : vector<8x8x8xf32> to vector<4x16x8xf32>
    %77 = vector.extract_strided_slice %76 {offsets = [0, 0, 0], sizes = [1, 16, 8], strides = [1, 1, 1]} : vector<4x16x8xf32> to vector<1x16x8xf32>
    %78 = vector.shape_cast %77 : vector<1x16x8xf32> to vector<16x8xf32>
    %79 = vector.extract_strided_slice %76 {offsets = [1, 0, 0], sizes = [1, 16, 8], strides = [1, 1, 1]} : vector<4x16x8xf32> to vector<1x16x8xf32>
    %80 = vector.shape_cast %79 : vector<1x16x8xf32> to vector<16x8xf32>
    %81 = vector.extract_strided_slice %76 {offsets = [2, 0, 0], sizes = [1, 16, 8], strides = [1, 1, 1]} : vector<4x16x8xf32> to vector<1x16x8xf32>
    %82 = vector.shape_cast %81 : vector<1x16x8xf32> to vector<16x8xf32>
    %83 = vector.extract_strided_slice %76 {offsets = [3, 0, 0], sizes = [1, 16, 8], strides = [1, 1, 1]} : vector<4x16x8xf32> to vector<1x16x8xf32>
    %84 = vector.shape_cast %83 : vector<1x16x8xf32> to vector<16x8xf32>
    %85 = tpu.concatenate %78, %80, %82, %84 in 1 : vector<16x8xf32>, vector<16x8xf32>, vector<16x8xf32>, vector<16x8xf32> -> vector<16x32xf32>
    %c0_20 = arith.constant 0 : index
    %c0_21 = arith.constant 0 : index
    %c0_22 = arith.constant 0 : index
    %86 = vector.load %arg2[%c0_20, %c0_21, %c0_22] : memref<2x32x32xf32, #tpu.memory_space<vmem>>, vector<1x32x32xf32>
    %87 = vector.shape_cast %86 : vector<1x32x32xf32> to vector<32x32xf32>
    %cst_23 = arith.constant dense<0.000000e+00> : vector<16x32xf32>
    %88 = tpu.matmul %85, %87, %cst_23 {dimension_numbers = #tpu.dot_dimension_numbers<[1], [0], [0], [1], [0, 0, 1, 1], [], []>} : vector<16x32xf32>, vector<32x32xf32>, vector<16x32xf32> -> vector<16x32xf32>
    %89 = arith.addf %0, %88 : vector<16x32xf32>
    %90 = arith.mulf %89, %89 : vector<16x32xf32>
    %cst_24 = arith.constant dense<0.000000e+00> : vector<16xf32>
    %91 = vector.multi_reduction <add>, %90, %cst_24 [1] : vector<16x32xf32> to vector<16xf32>
    %92 = vector.shape_cast %91 : vector<16xf32> to vector<16x1xf32>
    %cst_25 = arith.constant 3.200000e+01 : f32
    %93 = vector.broadcast %cst_25 : f32 to vector<16x1xf32>
    %94 = arith.divf %92, %93 : vector<16x1xf32>
    %cst_26 = arith.constant 9.99999997E-7 : f32
    %95 = vector.broadcast %cst_26 : f32 to vector<16x1xf32>
    %96 = arith.addf %94, %95 : vector<16x1xf32>
    %97 = math.rsqrt %96 : vector<16x1xf32>
    %98 = vector.broadcast %97 : vector<16x1xf32> to vector<16x32xf32>
    %99 = arith.mulf %89, %98 : vector<16x32xf32>
    %100 = vector.broadcast %10 : vector<1x32xf32> to vector<16x32xf32>
    %101 = arith.mulf %99, %100 : vector<16x32xf32>
    %c0_27 = arith.constant 0 : index
    %c0_28 = arith.constant 0 : index
    %c0_29 = arith.constant 0 : index
    %102 = vector.load %arg3[%c0_27, %c0_28, %c0_29] : memref<2x32x128xf32, #tpu.memory_space<vmem>>, vector<1x32x128xf32>
    %103 = vector.shape_cast %102 : vector<1x32x128xf32> to vector<32x128xf32>
    %cst_30 = arith.constant dense<0.000000e+00> : vector<16x128xf32>
    %104 = tpu.matmul %101, %103, %cst_30 {dimension_numbers = #tpu.dot_dimension_numbers<[1], [0], [0], [1], [0, 0, 1, 1], [], []>} : vector<16x32xf32>, vector<32x128xf32>, vector<16x128xf32> -> vector<16x128xf32>
    %105 = vector.extract_strided_slice %104 {offsets = [0, 0], sizes = [16, 64], strides = [1, 1]} : vector<16x128xf32> to vector<16x64xf32>
    %106 = vector.extract_strided_slice %104 {offsets = [0, 64], sizes = [16, 64], strides = [1, 1]} : vector<16x128xf32> to vector<16x64xf32>
    %107 = arith.negf %105 : vector<16x64xf32>
    %108 = math.exp %107 : vector<16x64xf32>
    %cst_31 = arith.constant 1.000000e+00 : f32
    %109 = vector.broadcast %cst_31 : f32 to vector<16x64xf32>
    %110 = arith.addf %109, %108 : vector<16x64xf32>
    %111 = arith.divf %109, %110 : vector<16x64xf32>
    %112 = arith.mulf %105, %111 : vector<16x64xf32>
    %113 = arith.mulf %112, %106 : vector<16x64xf32>
    %c0_32 = arith.constant 0 : index
    %c0_33 = arith.constant 0 : index
    %c0_34 = arith.constant 0 : index
    %114 = vector.load %arg4[%c0_32, %c0_33, %c0_34] : memref<2x64x32xf32, #tpu.memory_space<vmem>>, vector<1x64x32xf32>
    %115 = vector.shape_cast %114 : vector<1x64x32xf32> to vector<64x32xf32>
    %cst_35 = arith.constant dense<0.000000e+00> : vector<16x32xf32>
    %116 = tpu.matmul %113, %115, %cst_35 {dimension_numbers = #tpu.dot_dimension_numbers<[1], [0], [0], [1], [0, 0, 1, 1], [], []>} : vector<16x64xf32>, vector<64x32xf32>, vector<16x32xf32> -> vector<16x32xf32>
    %117 = arith.addf %89, %116 : vector<16x32xf32>
    %c1 = arith.constant 1 : index
    %c0_36 = arith.constant 0 : index
    %c0_37 = arith.constant 0 : index
    %118 = vector.load %arg5[%c1, %c0_36, %c0_37] : memref<2x1x32xf32, #tpu.memory_space<vmem>>, vector<1x1x32xf32>
    %119 = vector.shape_cast %118 : vector<1x1x32xf32> to vector<1x32xf32>
    %c1_38 = arith.constant 1 : index
    %c0_39 = arith.constant 0 : index
    %c0_40 = arith.constant 0 : index
    %120 = vector.load %arg6[%c1_38, %c0_39, %c0_40] : memref<2x1x32xf32, #tpu.memory_space<vmem>>, vector<1x1x32xf32>
    %121 = vector.shape_cast %120 : vector<1x1x32xf32> to vector<1x32xf32>
    %122 = arith.mulf %117, %117 : vector<16x32xf32>
    %cst_41 = arith.constant dense<0.000000e+00> : vector<16xf32>
    %123 = vector.multi_reduction <add>, %122, %cst_41 [1] : vector<16x32xf32> to vector<16xf32>
    %124 = vector.shape_cast %123 : vector<16xf32> to vector<16x1xf32>
    %cst_42 = arith.constant 3.200000e+01 : f32
    %125 = vector.broadcast %cst_42 : f32 to vector<16x1xf32>
    %126 = arith.divf %124, %125 : vector<16x1xf32>
    %cst_43 = arith.constant 9.99999997E-7 : f32
    %127 = vector.broadcast %cst_43 : f32 to vector<16x1xf32>
    %128 = arith.addf %126, %127 : vector<16x1xf32>
    %129 = math.rsqrt %128 : vector<16x1xf32>
    %130 = vector.broadcast %129 : vector<16x1xf32> to vector<16x32xf32>
    %131 = arith.mulf %117, %130 : vector<16x32xf32>
    %132 = vector.broadcast %119 : vector<1x32xf32> to vector<16x32xf32>
    %133 = arith.mulf %131, %132 : vector<16x32xf32>
    %c1_44 = arith.constant 1 : index
    %c0_45 = arith.constant 0 : index
    %c0_46 = arith.constant 0 : index
    %134 = vector.load %arg1[%c1_44, %c0_45, %c0_46] : memref<2x32x96xf32, #tpu.memory_space<vmem>>, vector<1x32x96xf32>
    %135 = vector.shape_cast %134 : vector<1x32x96xf32> to vector<32x96xf32>
    %cst_47 = arith.constant dense<0.000000e+00> : vector<16x96xf32>
    %136 = tpu.matmul %133, %135, %cst_47 {dimension_numbers = #tpu.dot_dimension_numbers<[1], [0], [0], [1], [0, 0, 1, 1], [], []>} : vector<16x32xf32>, vector<32x96xf32>, vector<16x96xf32> -> vector<16x96xf32>
    %137 = vector.extract_strided_slice %136 {offsets = [0, 0], sizes = [16, 32], strides = [1, 1]} : vector<16x96xf32> to vector<16x32xf32>
    %138 = vector.extract_strided_slice %137 {offsets = [0, 0], sizes = [16, 8], strides = [1, 1]} : vector<16x32xf32> to vector<16x8xf32>
    %139 = vector.shape_cast %138 : vector<16x8xf32> to vector<1x16x8xf32>
    %140 = vector.extract_strided_slice %137 {offsets = [0, 8], sizes = [16, 8], strides = [1, 1]} : vector<16x32xf32> to vector<16x8xf32>
    %141 = vector.shape_cast %140 : vector<16x8xf32> to vector<1x16x8xf32>
    %142 = vector.extract_strided_slice %137 {offsets = [0, 16], sizes = [16, 8], strides = [1, 1]} : vector<16x32xf32> to vector<16x8xf32>
    %143 = vector.shape_cast %142 : vector<16x8xf32> to vector<1x16x8xf32>
    %144 = vector.extract_strided_slice %137 {offsets = [0, 24], sizes = [16, 8], strides = [1, 1]} : vector<16x32xf32> to vector<16x8xf32>
    %145 = vector.shape_cast %144 : vector<16x8xf32> to vector<1x16x8xf32>
    %146 = tpu.concatenate %139, %141, %143, %145 in 0 : vector<1x16x8xf32>, vector<1x16x8xf32>, vector<1x16x8xf32>, vector<1x16x8xf32> -> vector<4x16x8xf32>
    %147 = vector.shape_cast %146 : vector<4x16x8xf32> to vector<8x8x8xf32>
    %148 = vector.extract_strided_slice %136 {offsets = [0, 32], sizes = [16, 32], strides = [1, 1]} : vector<16x96xf32> to vector<16x32xf32>
    %149 = vector.extract_strided_slice %148 {offsets = [0, 0], sizes = [16, 8], strides = [1, 1]} : vector<16x32xf32> to vector<16x8xf32>
    %150 = vector.shape_cast %149 : vector<16x8xf32> to vector<1x16x8xf32>
    %151 = vector.extract_strided_slice %148 {offsets = [0, 8], sizes = [16, 8], strides = [1, 1]} : vector<16x32xf32> to vector<16x8xf32>
    %152 = vector.shape_cast %151 : vector<16x8xf32> to vector<1x16x8xf32>
    %153 = vector.extract_strided_slice %148 {offsets = [0, 16], sizes = [16, 8], strides = [1, 1]} : vector<16x32xf32> to vector<16x8xf32>
    %154 = vector.shape_cast %153 : vector<16x8xf32> to vector<1x16x8xf32>
    %155 = vector.extract_strided_slice %148 {offsets = [0, 24], sizes = [16, 8], strides = [1, 1]} : vector<16x32xf32> to vector<16x8xf32>
    %156 = vector.shape_cast %155 : vector<16x8xf32> to vector<1x16x8xf32>
    %157 = tpu.concatenate %150, %152, %154, %156 in 0 : vector<1x16x8xf32>, vector<1x16x8xf32>, vector<1x16x8xf32>, vector<1x16x8xf32> -> vector<4x16x8xf32>
    %158 = vector.shape_cast %157 : vector<4x16x8xf32> to vector<8x8x8xf32>
    %159 = vector.extract_strided_slice %136 {offsets = [0, 64], sizes = [16, 32], strides = [1, 1]} : vector<16x96xf32> to vector<16x32xf32>
    %160 = vector.extract_strided_slice %159 {offsets = [0, 0], sizes = [16, 8], strides = [1, 1]} : vector<16x32xf32> to vector<16x8xf32>
    %161 = vector.shape_cast %160 : vector<16x8xf32> to vector<1x16x8xf32>
    %162 = vector.extract_strided_slice %159 {offsets = [0, 8], sizes = [16, 8], strides = [1, 1]} : vector<16x32xf32> to vector<16x8xf32>
    %163 = vector.shape_cast %162 : vector<16x8xf32> to vector<1x16x8xf32>
    %164 = vector.extract_strided_slice %159 {offsets = [0, 16], sizes = [16, 8], strides = [1, 1]} : vector<16x32xf32> to vector<16x8xf32>
    %165 = vector.shape_cast %164 : vector<16x8xf32> to vector<1x16x8xf32>
    %166 = vector.extract_strided_slice %159 {offsets = [0, 24], sizes = [16, 8], strides = [1, 1]} : vector<16x32xf32> to vector<16x8xf32>
    %167 = vector.shape_cast %166 : vector<16x8xf32> to vector<1x16x8xf32>
    %168 = tpu.concatenate %161, %163, %165, %167 in 0 : vector<1x16x8xf32>, vector<1x16x8xf32>, vector<1x16x8xf32>, vector<1x16x8xf32> -> vector<4x16x8xf32>
    %169 = vector.shape_cast %168 : vector<4x16x8xf32> to vector<8x8x8xf32>
    "tpu.trace_start"() <{level = 10 : i32, message = "nqd,nkd->nqk"}> : () -> ()
    %cst_48 = arith.constant dense<0.000000e+00> : vector<8x8x8xf32>
    %170 = tpu.matmul %147, %158, %cst_48 {dimension_numbers = #tpu.dot_dimension_numbers<[2], [2], [1], [1], [0, 0, 0, 1, 1, 1], [0], [0]>} : vector<8x8x8xf32>, vector<8x8x8xf32>, vector<8x8x8xf32> -> vector<8x8x8xf32>
    "tpu.trace_stop"() : () -> ()
    %cst_49 = arith.constant 0.353553385 : f32
    %171 = vector.broadcast %cst_49 : f32 to vector<8x8x8xf32>
    %172 = arith.mulf %170, %171 : vector<8x8x8xf32>
    %173 = vector.shape_cast %6 : vector<8x8xf32> to vector<1x8x8xf32>
    %174 = vector.broadcast %173 : vector<1x8x8xf32> to vector<8x8x8xf32>
    %175 = arith.addf %172, %174 : vector<8x8x8xf32>
    %cst_50 = arith.constant dense<0xFF800000> : vector<8x8xf32>
    %176 = vector.multi_reduction <maximumf>, %175, %cst_50 [2] : vector<8x8x8xf32> to vector<8x8xf32>
    %177 = vector.shape_cast %176 : vector<8x8xf32> to vector<8x8x1xf32>
    %178 = vector.broadcast %177 : vector<8x8x1xf32> to vector<8x8x8xf32>
    %179 = arith.subf %175, %178 : vector<8x8x8xf32>
    %180 = math.exp %179 : vector<8x8x8xf32>
    %cst_51 = arith.constant dense<0.000000e+00> : vector<8x8xf32>
    %181 = vector.multi_reduction <add>, %180, %cst_51 [2] : vector<8x8x8xf32> to vector<8x8xf32>
    %182 = vector.shape_cast %181 : vector<8x8xf32> to vector<8x8x1xf32>
    %183 = tpu.reciprocal %182 {approx = true} : vector<8x8x1xf32> -> vector<8x8x1xf32>
    %184 = vector.broadcast %183 : vector<8x8x1xf32> to vector<8x8x8xf32>
    %185 = arith.mulf %180, %184 : vector<8x8x8xf32>
    "tpu.trace_start"() <{level = 10 : i32, message = "nqk,nkd->nqd"}> : () -> ()
    %cst_52 = arith.constant dense<0.000000e+00> : vector<8x8x8xf32>
    %186 = tpu.matmul %185, %169, %cst_52 {dimension_numbers = #tpu.dot_dimension_numbers<[2], [1], [1], [2], [0, 0, 0, 1, 1, 2], [0], [0]>} : vector<8x8x8xf32>, vector<8x8x8xf32>, vector<8x8x8xf32> -> vector<8x8x8xf32>
    "tpu.trace_stop"() : () -> ()
    %187 = vector.shape_cast %186 : vector<8x8x8xf32> to vector<4x16x8xf32>
    %188 = vector.extract_strided_slice %187 {offsets = [0, 0, 0], sizes = [1, 16, 8], strides = [1, 1, 1]} : vector<4x16x8xf32> to vector<1x16x8xf32>
    %189 = vector.shape_cast %188 : vector<1x16x8xf32> to vector<16x8xf32>
    %190 = vector.extract_strided_slice %187 {offsets = [1, 0, 0], sizes = [1, 16, 8], strides = [1, 1, 1]} : vector<4x16x8xf32> to vector<1x16x8xf32>
    %191 = vector.shape_cast %190 : vector<1x16x8xf32> to vector<16x8xf32>
    %192 = vector.extract_strided_slice %187 {offsets = [2, 0, 0], sizes = [1, 16, 8], strides = [1, 1, 1]} : vector<4x16x8xf32> to vector<1x16x8xf32>
    %193 = vector.shape_cast %192 : vector<1x16x8xf32> to vector<16x8xf32>
    %194 = vector.extract_strided_slice %187 {offsets = [3, 0, 0], sizes = [1, 16, 8], strides = [1, 1, 1]} : vector<4x16x8xf32> to vector<1x16x8xf32>
    %195 = vector.shape_cast %194 : vector<1x16x8xf32> to vector<16x8xf32>
    %196 = tpu.concatenate %189, %191, %193, %195 in 1 : vector<16x8xf32>, vector<16x8xf32>, vector<16x8xf32>, vector<16x8xf32> -> vector<16x32xf32>
    %c1_53 = arith.constant 1 : index
    %c0_54 = arith.constant 0 : index
    %c0_55 = arith.constant 0 : index
    %197 = vector.load %arg2[%c1_53, %c0_54, %c0_55] : memref<2x32x32xf32, #tpu.memory_space<vmem>>, vector<1x32x32xf32>
    %198 = vector.shape_cast %197 : vector<1x32x32xf32> to vector<32x32xf32>
    %cst_56 = arith.constant dense<0.000000e+00> : vector<16x32xf32>
    %199 = tpu.matmul %196, %198, %cst_56 {dimension_numbers = #tpu.dot_dimension_numbers<[1], [0], [0], [1], [0, 0, 1, 1], [], []>} : vector<16x32xf32>, vector<32x32xf32>, vector<16x32xf32> -> vector<16x32xf32>
    %200 = arith.addf %117, %199 : vector<16x32xf32>
    %201 = arith.mulf %200, %200 : vector<16x32xf32>
    %cst_57 = arith.constant dense<0.000000e+00> : vector<16xf32>
    %202 = vector.multi_reduction <add>, %201, %cst_57 [1] : vector<16x32xf32> to vector<16xf32>
    %203 = vector.shape_cast %202 : vector<16xf32> to vector<16x1xf32>
    %cst_58 = arith.constant 3.200000e+01 : f32
    %204 = vector.broadcast %cst_58 : f32 to vector<16x1xf32>
    %205 = arith.divf %203, %204 : vector<16x1xf32>
    %cst_59 = arith.constant 9.99999997E-7 : f32
    %206 = vector.broadcast %cst_59 : f32 to vector<16x1xf32>
    %207 = arith.addf %205, %206 : vector<16x1xf32>
    %208 = math.rsqrt %207 : vector<16x1xf32>
    %209 = vector.broadcast %208 : vector<16x1xf32> to vector<16x32xf32>
    %210 = arith.mulf %200, %209 : vector<16x32xf32>
    %211 = vector.broadcast %121 : vector<1x32xf32> to vector<16x32xf32>
    %212 = arith.mulf %210, %211 : vector<16x32xf32>
    %c1_60 = arith.constant 1 : index
    %c0_61 = arith.constant 0 : index
    %c0_62 = arith.constant 0 : index
    %213 = vector.load %arg3[%c1_60, %c0_61, %c0_62] : memref<2x32x128xf32, #tpu.memory_space<vmem>>, vector<1x32x128xf32>
    %214 = vector.shape_cast %213 : vector<1x32x128xf32> to vector<32x128xf32>
    %cst_63 = arith.constant dense<0.000000e+00> : vector<16x128xf32>
    %215 = tpu.matmul %212, %214, %cst_63 {dimension_numbers = #tpu.dot_dimension_numbers<[1], [0], [0], [1], [0, 0, 1, 1], [], []>} : vector<16x32xf32>, vector<32x128xf32>, vector<16x128xf32> -> vector<16x128xf32>
    %216 = vector.extract_strided_slice %215 {offsets = [0, 0], sizes = [16, 64], strides = [1, 1]} : vector<16x128xf32> to vector<16x64xf32>
    %217 = vector.extract_strided_slice %215 {offsets = [0, 64], sizes = [16, 64], strides = [1, 1]} : vector<16x128xf32> to vector<16x64xf32>
    %218 = arith.negf %216 : vector<16x64xf32>
    %219 = math.exp %218 : vector<16x64xf32>
    %cst_64 = arith.constant 1.000000e+00 : f32
    %220 = vector.broadcast %cst_64 : f32 to vector<16x64xf32>
    %221 = arith.addf %220, %219 : vector<16x64xf32>
    %222 = arith.divf %220, %221 : vector<16x64xf32>
    %223 = arith.mulf %216, %222 : vector<16x64xf32>
    %224 = arith.mulf %223, %217 : vector<16x64xf32>
    %c1_65 = arith.constant 1 : index
    %c0_66 = arith.constant 0 : index
    %c0_67 = arith.constant 0 : index
    %225 = vector.load %arg4[%c1_65, %c0_66, %c0_67] : memref<2x64x32xf32, #tpu.memory_space<vmem>>, vector<1x64x32xf32>
    %226 = vector.shape_cast %225 : vector<1x64x32xf32> to vector<64x32xf32>
    %cst_68 = arith.constant dense<0.000000e+00> : vector<16x32xf32>
    %227 = tpu.matmul %224, %226, %cst_68 {dimension_numbers = #tpu.dot_dimension_numbers<[1], [0], [0], [1], [0, 0, 1, 1], [], []>} : vector<16x64xf32>, vector<64x32xf32>, vector<16x32xf32> -> vector<16x32xf32>
    %228 = arith.addf %200, %227 : vector<16x32xf32>
    %c0_69 = arith.constant 0 : index
    %c0_70 = arith.constant 0 : index
    %229 = vector.load %arg7[%c0_69, %c0_70] : memref<16x32xf32, #tpu.memory_space<vmem>>, vector<16x32xf32>
    tpu.vector_store %arg7[%c0_69, %c0_70], %228 {strides = array<i32>} : memref<16x32xf32, #tpu.memory_space<vmem>>, vector<16x32xf32>,
    return
  }
}

</mosaic_0001>

<bundles_post_ra>
// kernel: tpu_custom_call.1
= control target key start
LH: loop header
LB: loop body
LE: loop exit
PB: predicated region body
PF: predicated region fallthrough
CT: control target
= control target key end

     0   :  { %12 = vsyncpa [#allocation3], 0  ;;  %s5048_s0 = inlined_call_operand.hbm [shape: f32[16,32], index: 0, kind: input, shape index: {}]   ;;  %s5049_s1 = inlined_call_operand.vmem [shape: f32[2,32,96], index: 1, kind: input, shape index: {}]   ;;  %s5050_s2 = inlined_call_operand.vmem [shape: f32[2,32,32], index: 2, kind: input, shape index: {}]   ;;  %s5051_s3 = inlined_call_operand.vmem [shape: f32[2,32,128], index: 3, kind: input, shape index: {}]   ;;  %s5052_s4 = inlined_call_operand.vmem [shape: f32[2,64,32], index: 4, kind: input, shape index: {}]   ;;  %s5053_s5 = inlined_call_operand.vmem [shape: f32[2,1,32], index: 5, kind: input, shape index: {}]   ;;  %s5054_s6 = inlined_call_operand.vmem [shape: f32[2,1,32], index: 6, kind: input, shape index: {}]   ;;  %s5055_s7 = inlined_call_operand.hbm [shape: f32[16,32], index: 7, kind: output, shape index: {}]  }
   0x1   :  { %13 = vsyncpa [#allocation4], 0  ;;  %s4368_s24 = smov [#allocation2]   ;;  %s4320_s28 = scalar_lea.hbm %s5048_s0, 256 }
   0x2   :  { %s19_s25 = sshll.u32 %s4368_s24, 4  ;;  %p4321_p0 = scmp.ne.s32.totalorder %s5048_s0, %s4320_s28  ;;  %s20_s25 = int_to_ptr.vmem [resolvable:$true] %s19_s25 }
   0x3   :  { %p4324_p1 = scmp.lt.u32.totalorder %s4320_s28, %s5048_s0 }
   0x5   :  { %p4326_p2 = pnand %p4324_p1, %p4321_p0 }
   0x7   :  { %4329 = shalt.err (!%p4326_p2)
}
   0x8   :  { %s4330_s10 = scalar_lea.vmem %s20_s25, 256  ;;  %p4335_p4 = scmp.lt.s32.totalorder %s20_s25, %s20_s25 }
   0x9   :  { %p4331_p3 = scmp.ne.s32.totalorder %s20_s25, %s4330_s10  ;;  %p4336_p5 = scmp.lt.s32.totalorder %s4330_s10, %s4330_s10 }
   0xb   :  { %p4337_p6 = por %p4336_p5, %p4335_p4 }
   0xd   :  { %p4338_p7 = pnand %p4337_p6, %p4331_p3 }
   0xf   :  { %4341 = shalt.err (!%p4338_p7)
}
  0x10   :  { %s4369_s11 = smov 128   ;;  %s4370_s12 = smov 8  }
  0x11   :  { %25 = dma.hbm_to_vmem [thread:$0]  %s5048_s0, 256, %s20_s25, [#allocation3], %s4369_s11, %s4369_s11, %s4370_s12  }
  0x12   :  { %4364 = dma.done.wait [#allocation3], 256  }
  0x13   :  { %4365 = vsyncadd [#allocation3], 4294967040  ;;  %v4437_v0 = vld [vmem:[#allocation2] sm:$0xff]  ;;  %vm53_vm0 = vcmask 261120   ;;  %v4439_v1 = vld [vmem:[#allocation2 + $0x8] sm:$0xff]  ;;  %s4371_s24 = smov 120   ;;  %v43_v42 = vlaneseq }
  0x14   :  { %v51_v2 = vmul.f32 %v4437_v0, %v4437_v0  ;;  %v52_v3 = vmul.f32 %v4439_v1, %v4439_v1  ;;  %v77_v6 = vld [vmem:[%s5049_s1] sm:$0xff]  ;;  %v78_v7 = vld [vmem:[%s5049_s1 + $0x8] sm:$0xff]  ;;  %v79_v8 = vld [vmem:[%s5049_s1 + $0x10] sm:$0xff]  ;;  %s4372_s25 = smov 112   ;;  %v4373_v27 = vmov 0.0   ;;  %vm4374_vm1 = vmmov 0  }
  0x15   :  { %v4130_v9 = vpack.c.bf16 %v78_v7, %v77_v6  ;;  %v80_v10 = vld [vmem:[%s5049_s1 + $0x18] sm:$0xff]  ;;  %v3652_v19 = vld [vmem:[%s5053_s5] ss:$0 sm:$0xff]  ;;  %3887 = vmatprep.subr.mxu0 %v4373_v27  ;;  %3889 = vmatprep.mubr.msk.f32.mxu0 %vm4374_vm1, %v4373_v27  ;;  %s4375_s26 = smov 104   ;;  %s4376_s27 = smov 96   ;;  %vm178_vm2 = vcmask 64512  }
  0x16   :  { %v54_v4 = vsel %vm53_vm0, %v51_v2, 0.0  ;;  %v57_v5 = vsel %vm53_vm0, %v52_v3, 0.0  ;;  %v4134_v11 = vpack.c.bf16 %v80_v10, %v79_v8  ;;  %v44_v43 = vshrl.u32 %v43_v42, 7  ;;  %s4378_s28 = smov 64   ;;  %s4379_s15 = smov 16  }
  0x17   :  { %55 = vadd.xlane.f32.xlu0 %v54_v4  ;;  %4131 = vmatprep.subr.bf16.mxu1 %v4130_v9  ;;  %v46_v44 = vand.u32 127, %v43_v42  ;;  %v4377_v46 = vmov -1e+30   ;;  %s4380_s16 = smov 24   ;;  %vm1523_vm4 = vcmask 130048   ;;  %vm1526_vm5 = vcmask 195584  }
  0x18   :  { %4133 = vmatpush3.bf16.msra.mxu1 %v4130_v9  ;;  %vm1757_vm6 = vcmask 523264  }
  0x19   :  { %4135 = vmatprep.subr.bf16.mxu1 %v4134_v11  ;;  %vm47_vm3 = vcmp.ge.s32.totalorder %v44_v43, %v46_v44 }
  0x1a   :  { %v4564_v47 = vsel %vm47_vm3, 0.0, %v4377_v46 }
  0x1b   :  { %58 = vadd.xlane.f32.xlu0 %v57_v5 }
  0x1c   :  { %4137 = vmatpush3.bf16.msra.mxu1 %v4134_v11 }
  0x1d   :  { %3877 = vmatprep.subr.mxu1 %v4373_v27 }
  0xa4   :  { %v56_v12 = vpop.xlane.xlu0 %55 }
  0xa5   :  { %v61_v13 = vmul.f32 0.03125, %v56_v12 }
  0xa7   :  { %v63_v14 = vadd.f32 1e-06, %v61_v13 }
  0xa8   :  { %v59_v15 = vpop.xlane.xlu0 %58 }
  0xa9   :  { %4224 = vrsqrt.f32 %v63_v14  ;;  %v62_v16 = vmul.f32 0.03125, %v59_v15 }
  0xab   :  { %v64_v17 = vadd.f32 1e-06, %v62_v16 }
  0xad   :  { %4226 = vrsqrt.f32 %v64_v17 }
  0xb3   :  { %v4225_v18 = vpop.eup %4224 }
  0xb4   :  { %v67_v20 = vmul.f32 %v4225_v18, %v4437_v0 }
  0xb6   :  { %v75_v21 = vmul.f32 %v3652_v19, %v67_v20 }
  0xb7   :  { %v4227_v22 = vpop.eup %4226 }
  0xb8   :  { %v68_v23 = vmul.f32 %v4227_v22, %v4439_v1  ;;  %3874 = vmatprep.mubr.msk.f32.mxu1 %vm53_vm0, %v75_v21 }
  0xba   :  { %v76_v24 = vmul.f32 %v3652_v19, %v68_v23 }
  0xbc   :  { %3875 = vmatmul.mubr.msk.f32.vlgmr.msra.gmra.mrb[0].mxu1 %vm53_vm0, %v76_v24 }
  0xbd   :  { %3879 = vmatprep.mubr.msk.f32.mxu1 %vm4374_vm1, %v4373_v27 }
 0x18f   :  { %v4466_v25 = vpop.f32.mrb[0].mxu1 }
 0x190   :  { %166 = vrot.lane.b32.xlu1 %v4466_v25, %s4371_s24  ;;  %v4470_v26 = vpop.f32.mrb[1].mxu1 }
 0x191   :  { %168 = vrot.lane.b32.xlu0 %v4470_v26, %s4372_s25 }
 0x194   :  { %164 = vrot.lane.b32.xlu1 %v4470_v26, %s4371_s24 }
 0x198   :  { %170 = vrot.lane.b32.xlu1 %v4466_v25, %s4372_s25 }
 0x19c   :  { %172 = vrot.lane.b32.xlu1 %v4470_v26, %s4375_s26 }
 0x1a0   :  { %174 = vrot.lane.b32.xlu1 %v4466_v25, %s4375_s26 }
 0x1a4   :  { %176 = vrot.lane.b32.xlu1 %v4470_v26, %s4376_s27 }
 0x1a8   :  { %253 = vrot.lane.b32.xlu1 %v4466_v25, %s4376_s27 }
 0x202   :  { %v4492_v28 = vpop.permute.xlu1 %166 }
 0x203   :  { %405 = vrot.lane.b32.xlu0 %v4492_v28, %s4376_s27  ;;  %v4500_v30 = vpop.permute.xlu0 %168 }
 0x206   :  { %v4496_v29 = vpop.permute.xlu1 %164 }
 0x207   :  { %329 = vrot.lane.b32.xlu1 %v4496_v29, %s4376_s27 }
 0x20a   :  { %v4502_v31 = vpop.permute.xlu1 %170 }
 0x20b   :  { %481 = vrot.lane.b32.xlu1 %v4500_v30, %s4376_s27  ;;  %557 = vrot.lane.b32.xlu0 %v4502_v31, %s4376_s27 }
 0x20e   :  { %v4508_v32 = vpop.permute.xlu1 %172 }
 0x20f   :  { %633 = vrot.lane.b32.xlu1 %v4508_v32, %s4376_s27 }
 0x212   :  { %v4512_v33 = vpop.permute.xlu1 %174 }
 0x213   :  { %709 = vrot.lane.b32.xlu0 %v4512_v33, %s4376_s27 }
 0x216   :  { %v177_v34 = vpop.permute.xlu1 %176 }
 0x217   :  { %3878 = vmatpush3.xpose.msk.msra.mxu1 %vm178_vm2, %v177_v34 }
 0x218   :  { %3882 = vmatprep.subr.mxu1 %v4373_v27 }
 0x21a   :  { %3880 = vmatmul.mubr.msk.f32.vlgmr.msra.gmra.mrb[2].mxu1 %vm178_vm2, %v4470_v26  ;;  %v254_v35 = vpop.permute.xlu1 %253 }
 0x21b   :  { %3883 = vmatpush3.xpose.msk.msra.mxu1 %vm178_vm2, %v254_v35  ;;  %3884 = vmatprep.mubr.msk.f32.mxu1 %vm4374_vm1, %v4373_v27 }
 0x21c   :  { %3892 = vmatprep.subr.mxu1 %v4373_v27 }
 0x21e   :  { %3885 = vmatmul.mubr.msk.f32.vlgmr.msra.gmra.mrb[4].mxu1 %vm178_vm2, %v4466_v25 }
 0x21f   :  { %3894 = vmatprep.mubr.msk.f32.mxu1 %vm4374_vm1, %v4373_v27 }
 0x275   :  { %v406_v36 = vpop.permute.xlu0 %405 }
 0x276   :  { %3893 = vmatpush3.xpose.msk.msra.mxu1 %vm178_vm2, %v406_v36 }
 0x277   :  { %3902 = vmatprep.subr.mxu1 %v4373_v27 }
 0x279   :  { %3895 = vmatmul.mubr.msk.f32.vlgmr.msra.gmra.mrb[6].mxu1 %vm178_vm2, %v4492_v28  ;;  %v330_v37 = vpop.permute.xlu1 %329 }
 0x27a   :  { %3888 = vmatpush3.xpose.msk.msra.mxu0 %vm178_vm2, %v330_v37  ;;  %3904 = vmatprep.mubr.msk.f32.mxu1 %vm4374_vm1, %v4373_v27 }
 0x27b   :  { %3897 = vmatprep.subr.mxu0 %v4373_v27 }
 0x27d   :  { %v558_v38 = vpop.permute.xlu0 %557  ;;  %3890 = vmatmul.mubr.msk.f32.vlgmr.msra.gmra.mrb[0].mxu0 %vm178_vm2, %v4496_v29  ;;  %v482_v39 = vpop.permute.xlu1 %481 }
 0x27e   :  { %3898 = vmatpush3.xpose.msk.msra.mxu0 %vm178_vm2, %v482_v39  ;;  %3903 = vmatpush3.xpose.msk.msra.mxu1 %vm178_vm2, %v558_v38 }
 0x27f   :  { %3899 = vmatprep.mubr.msk.f32.mxu0 %vm4374_vm1, %v4373_v27  ;;  %3907 = vmatprep.subr.mxu0 %v4373_v27 }
 0x280   :  { %3912 = vmatprep.subr.mxu1 %v4373_v27 }
 0x281   :  { %3900 = vmatmul.mubr.msk.f32.vlgmr.msra.gmra.mrb[2].mxu0 %vm178_vm2, %v4500_v30  ;;  %3905 = vmatmul.mubr.msk.f32.vlgmr.msra.gmra.mrb[8].mxu1 %vm178_vm2, %v4502_v31  ;;  %v634_v40 = vpop.permute.xlu1 %633 }
 0x282   :  { %3908 = vmatpush3.xpose.msk.msra.mxu0 %vm178_vm2, %v634_v40  ;;  %3909 = vmatprep.mubr.msk.f32.mxu0 %vm4374_vm1, %v4373_v27 }
 0x283   :  { %3914 = vmatprep.mubr.msk.f32.mxu1 %vm4374_vm1, %v4373_v27  ;;  %3917 = vmatprep.subr.mxu0 %v4373_v27 }
 0x285   :  { %v710_v41 = vpop.permute.xlu0 %709  ;;  %3910 = vmatmul.mubr.msk.f32.vlgmr.msra.gmra.mrb[4].mxu0 %vm178_vm2, %v4508_v32 }
 0x286   :  { %3913 = vmatpush3.xpose.msk.msra.mxu1 %vm178_vm2, %v710_v41  ;;  %3919 = vmatprep.mubr.msk.f32.mxu0 %vm4374_vm1, %v4373_v27 }
 0x287   :  { %3922 = vmatprep.subr.mxu1 %v4373_v27 }
 0x289   :  { %3915 = vmatmul.mubr.msk.f32.vlgmr.msra.gmra.mrb[10].mxu1 %vm178_vm2, %v4512_v33 }
 0x28a   :  { %3924 = vmatprep.mubr.msk.f32.mxu1 %vm4374_vm1, %v4373_v27 }
 0x2ed   :  { %v249_v45 = vpop.f32.mrb[2].mxu1 }
 0x2ee   :  { %v785_v48 = vmul.f32 0.35355338, %v249_v45  ;;  %v3881_v49 = vpop.f32.mrb[3].mxu1 }
 0x2f0   :  { %v793_v50 = vadd.f32 %v785_v48, %v4564_v47 }
 0x2f1   :  { %v325_v51 = vpop.f32.mrb[4].mxu1 }
 0x2f2   :  { %v786_v52 = vmul.f32 0.35355338, %v325_v51  ;;  %v3886_v53 = vpop.f32.mrb[5].mxu1  ;;  %v801_v54 = vsel %vm178_vm2, %v793_v50, -inf }
 0x2f3   :  { %802 = vmax.xlane.f32.xlu1 %v801_v54 }
 0x2f4   :  { %v794_v55 = vadd.f32 %v786_v52, %v4564_v47 }
 0x2f6   :  { %v804_v56 = vsel %vm178_vm2, %v794_v55, -inf }
 0x2f7   :  { %805 = vmax.xlane.f32.xlu0 %v804_v56 }
 0x34c   :  { %v477_v57 = vpop.f32.mrb[6].mxu1 }
 0x34d   :  { %v788_v58 = vmul.f32 0.35355338, %v477_v57  ;;  %v3896_v59 = vpop.f32.mrb[7].mxu1 }
 0x34f   :  { %v796_v60 = vadd.f32 %v788_v58, %v4564_v47 }
 0x350   :  { %v401_v61 = vpop.f32.mrb[0].mxu0 }
 0x351   :  { %v787_v62 = vmul.f32 0.35355338, %v401_v61  ;;  %v3891_v63 = vpop.f32.mrb[1].mxu0  ;;  %v810_v2 = vsel %vm178_vm2, %v796_v60, -inf }
 0x352   :  { %811 = vmax.xlane.f32.xlu1 %v810_v2 }
 0x353   :  { %v795_v3 = vadd.f32 %v787_v62, %v4564_v47 }
 0x354   :  { %v553_v4 = vpop.f32.mrb[2].mxu0  ;;  %v629_v5 = vpop.f32.mrb[8].mxu1 }
 0x355   :  { %v789_v6 = vmul.f32 0.35355338, %v553_v4  ;;  %v790_v7 = vmul.f32 0.35355338, %v629_v5  ;;  %v3901_v8 = vpop.f32.mrb[3].mxu0  ;;  %v3906_v9 = vpop.f32.mrb[9].mxu1 }
 0x356   :  { %v807_v10 = vsel %vm178_vm2, %v795_v3, -inf }
 0x357   :  { %808 = vmax.xlane.f32.xlu0 %v807_v10  ;;  %v798_v11 = vadd.f32 %v790_v7, %v4564_v47  ;;  %v797_v12 = vadd.f32 %v789_v6, %v4564_v47 }
 0x358   :  { %v705_v13 = vpop.f32.mrb[4].mxu0 }
 0x359   :  { %v791_v14 = vmul.f32 0.35355338, %v705_v13  ;;  %v3911_v15 = vpop.f32.mrb[5].mxu0  ;;  %v816_v16 = vsel %vm178_vm2, %v798_v11, -inf  ;;  %v813_v17 = vsel %vm178_vm2, %v797_v12, -inf }
 0x35a   :  { %817 = vmax.xlane.f32.xlu1 %v816_v16 }
 0x35b   :  { %814 = vmax.xlane.f32.xlu0 %v813_v17  ;;  %v799_v18 = vadd.f32 %v791_v14, %v4564_v47 }
 0x35c   :  { %v781_v19 = vpop.f32.mrb[10].mxu1 }
 0x35d   :  { %v792_v20 = vmul.f32 0.35355338, %v781_v19  ;;  %v3916_v21 = vpop.f32.mrb[11].mxu1  ;;  %v819_v22 = vsel %vm178_vm2, %v799_v18, -inf }
 0x35f   :  { %820 = vmax.xlane.f32.xlu0 %v819_v22  ;;  %v800_v23 = vadd.f32 %v792_v20, %v4564_v47 }
 0x361   :  { %v822_v24 = vsel %vm178_vm2, %v800_v23, -inf }
 0x362   :  { %823 = vmax.xlane.f32.xlu1 %v822_v24 }
 0x373   :  { %965 = vrot.lane.b32.xlu1 %v4466_v25, %s4378_s28 }
 0x375   :  { %889 = vrot.lane.b32.xlu0 %v4470_v26, %s4378_s28 }
 0x377   :  { %1041 = vrot.lane.b32.xlu1 %v4496_v29, %s4378_s28 }
 0x379   :  { %1117 = vrot.lane.b32.xlu0 %v4492_v28, %s4378_s28 }
 0x37b   :  { %1193 = vrot.lane.b32.xlu1 %v4500_v30, %s4378_s28 }
 0x37d   :  { %1269 = vrot.lane.b32.xlu0 %v4502_v31, %s4378_s28 }
 0x380   :  { %v803_v34 = vpop.xlane.xlu1 %802 }
 0x381   :  { %v825_v35 = vsub.f32 %v793_v50, %v803_v34 }
 0x383   :  { %v833_v25 = vmul.f32 1.442695, %v825_v35 }
 0x384   :  { %v806_v36 = vpop.xlane.xlu0 %805 }
 0x385   :  { %v826_v37 = vsub.f32 %v794_v55, %v806_v36  ;;  %4228 = vpow2.f32 %v833_v25 }
 0x387   :  { %v835_v38 = vmul.f32 1.442695, %v826_v37 }
 0x389   :  { %4230 = vpow2.f32 %v835_v38 }
 0x38f   :  { %v4594_v26 = vpop.eup %4228 }
 0x390   :  { %v849_v28 = vsel %vm178_vm2, %v4594_v26, 0.0 }
 0x393   :  { %v4596_v29 = vpop.eup %4230 }
 0x394   :  { %v852_v30 = vsel %vm178_vm2, %v4596_v29, 0.0 }
 0x39c   :  { %850 = vadd.xlane.f32.xlu0 %v849_v28 }
 0x39f   :  { %853 = vadd.xlane.f32.xlu1 %v852_v30 }
 0x3df   :  { %v812_v31 = vpop.xlane.xlu1 %811 }
 0x3e0   :  { %v828_v39 = vsub.f32 %v796_v60, %v812_v31 }
 0x3e2   :  { %v839_v40 = vmul.f32 1.442695, %v828_v39 }
 0x3e4   :  { %4232 = vpow2.f32 %v839_v40  ;;  %v809_v41 = vpop.xlane.xlu0 %808 }
 0x3e5   :  { %v827_v42 = vsub.f32 %v795_v3, %v809_v41 }
 0x3e7   :  { %v837_v43 = vmul.f32 1.442695, %v827_v42  ;;  %v818_v44 = vpop.xlane.xlu1 %817 }
 0x3e8   :  { %v815_v45 = vpop.xlane.xlu0 %814  ;;  %v830_v46 = vsub.f32 %v798_v11, %v818_v44  ;;  %v1529_v44 = vld [vmem:[%s5050_s2] sm:$0xff] }
 0x3e9   :  { %4234 = vpow2.f32 %v837_v43  ;;  %v829_v48 = vsub.f32 %v797_v12, %v815_v45  ;;  %v1530_v45 = vld [vmem:[%s5050_s2 + $0x8] sm:$0xff] }
 0x3ea   :  { %v843_v49 = vmul.f32 1.442695, %v830_v46  ;;  %v4138_v46 = vpack.c.bf16 %v1530_v45, %v1529_v44  ;;  %v1753_v45 = vld [vmem:[%s5052_s4 + $0x20] sm:$0xff] }
 0x3eb   :  { %v841_v50 = vmul.f32 1.442695, %v829_v48 }
 0x3ec   :  { %4236 = vpow2.f32 %v843_v49  ;;  %v821_v51 = vpop.xlane.xlu0 %820  ;;  %v1531_v49 = vld [vmem:[%s5050_s2 + $0x10] sm:$0xff] }
 0x3ed   :  { %4238 = vpow2.f32 %v841_v50  ;;  %v831_v52 = vsub.f32 %v799_v18, %v821_v51  ;;  %v1532_v50 = vld [vmem:[%s5050_s2 + $0x18] sm:$0xff] }
 0x3ee   :  { %v4233_v53 = vpop.eup %4232 }
 0x3ef   :  { %v845_v54 = vmul.f32 1.442695, %v831_v52  ;;  %v824_v55 = vpop.xlane.xlu1 %823  ;;  %v858_v56 = vsel %vm178_vm2, %v4233_v53, 0.0  ;;  %v4142_v52 = vpack.c.bf16 %v1532_v50, %v1531_v49  ;;  %v1755_v49 = vld [vmem:[%s5052_s4 + $0x30] sm:$0xff]  ;;  %v1756_v50 = vld [vmem:[%s5052_s4 + $0x38] sm:$0xff] }
 0x3f0   :  { %v890_v57 = vpop.permute.xlu0 %889  ;;  %v832_v58 = vsub.f32 %v800_v23, %v824_v55  ;;  %859 = vadd.xlane.f32.xlu1 %v858_v56 }
 0x3f1   :  { %4240 = vpow2.f32 %v845_v54  ;;  %3918 = vmatpush3.msra.mxu0 %v890_v57 }
 0x3f2   :  { %v847_v59 = vmul.f32 1.442695, %v832_v58  ;;  %3927 = vmatprep.subr.mxu0 %v4373_v27 }
 0x3f3   :  { %v4235_v60 = vpop.eup %4234  ;;  %v966_v61 = vpop.permute.xlu1 %965 }
 0x3f4   :  { %4242 = vpow2.f32 %v847_v59  ;;  %v855_v62 = vsel %vm178_vm2, %v4235_v60, 0.0  ;;  %3923 = vmatpush3.msra.mxu1 %v966_v61  ;;  %v1118_v9 = vpop.permute.xlu0 %1117 }
 0x3f5   :  { %856 = vadd.xlane.f32.xlu0 %v855_v62  ;;  %3932 = vmatprep.subr.mxu1 %v4373_v27 }
 0x3f6   :  { %v4237_v63 = vpop.eup %4236 }
 0x3f7   :  { %v4239_v2 = vpop.eup %4238  ;;  %v864_v3 = vsel %vm178_vm2, %v4237_v63, 0.0  ;;  %v1042_v10 = vpop.permute.xlu1 %1041 }
 0x3f8   :  { %v861_v4 = vsel %vm178_vm2, %v4239_v2, 0.0  ;;  %865 = vadd.xlane.f32.xlu1 %v864_v3  ;;  %v1270_v11 = vpop.permute.xlu0 %1269 }
 0x3f9   :  { %862 = vadd.xlane.f32.xlu0 %v861_v4 }
 0x3fb   :  { %v4608_v5 = vpop.eup %4240  ;;  %v1194_v12 = vpop.permute.xlu1 %1193 }
 0x3fc   :  { %v867_v6 = vsel %vm178_vm2, %v4608_v5, 0.0 }
 0x3fd   :  { %868 = vadd.xlane.f32.xlu0 %v867_v6 }
 0x3fe   :  { %v4612_v7 = vpop.eup %4242 }
 0x3ff   :  { %v870_v8 = vsel %vm178_vm2, %v4612_v7, 0.0 }
 0x400   :  { %871 = vadd.xlane.f32.xlu1 %v870_v8 }
 0x411   :  { %1345 = vrot.lane.b32.xlu1 %v4508_v32, %s4378_s28 }
 0x413   :  { %1421 = vrot.lane.b32.xlu0 %v4512_v33, %s4378_s28 }
 0x429   :  { %v851_v13 = vpop.xlane.xlu0 %850 }
 0x42a   :  { %4244 = vrcp.f32 %v851_v13 }
 0x42c   :  { %v854_v14 = vpop.xlane.xlu1 %853 }
 0x42d   :  { %4246 = vrcp.f32 %v854_v14 }
 0x434   :  { %v4245_v15 = vpop.eup %4244 }
 0x435   :  { %v881_v16 = vmul.f32 %v4245_v15, %v4594_v26 }
 0x437   :  { %v4247_v17 = vpop.eup %4246  ;;  %3920 = vmatmul.mubr.msk.f32.vlgmr.msra.gmra.mrb[6].mxu0 %vm178_vm2, %v881_v16 }
 0x438   :  { %v882_v18 = vmul.f32 %v4247_v17, %v4596_v29  ;;  %3928 = vmatpush3.msra.mxu0 %v1042_v10  ;;  %3929 = vmatprep.mubr.msk.f32.mxu0 %vm4374_vm1, %v4373_v27 }
 0x439   :  { %3937 = vmatprep.subr.mxu0 %v4373_v27 }
 0x43a   :  { %3925 = vmatmul.mubr.msk.f32.vlgmr.msra.gmra.mrb[12].mxu1 %vm178_vm2, %v882_v18 }
 0x43b   :  { %3933 = vmatpush3.msra.mxu1 %v1118_v9  ;;  %3934 = vmatprep.mubr.msk.f32.mxu1 %vm4374_vm1, %v4373_v27 }
 0x43c   :  { %3942 = vmatprep.subr.mxu1 %v4373_v27 }
 0x47d   :  { %v860_v32 = vpop.xlane.xlu1 %859 }
 0x47e   :  { %4248 = vrcp.f32 %v860_v32 }
 0x482   :  { %v857_v33 = vpop.xlane.xlu0 %856 }
 0x483   :  { %4250 = vrcp.f32 %v857_v33 }
 0x485   :  { %v866_v19 = vpop.xlane.xlu1 %865 }
 0x486   :  { %v863_v20 = vpop.xlane.xlu0 %862  ;;  %4252 = vrcp.f32 %v866_v19  ;;  %v1642_v19 = vld [vmem:[%s5051_s3 + $0x10] sm:$0xff] }
 0x487   :  { %4254 = vrcp.f32 %v863_v20 }
 0x488   :  { %v4249_v21 = vpop.eup %4248 }
 0x489   :  { %v884_v22 = vmul.f32 %v4249_v21, %v4233_v53  ;;  %v1643_v21 = vld [vmem:[%s5051_s3 + $0x18] sm:$0xff] }
 0x48a   :  { %v869_v23 = vpop.xlane.xlu0 %868 }
 0x48b   :  { %4256 = vrcp.f32 %v869_v23  ;;  %3935 = vmatmul.mubr.msk.f32.vlgmr.msra.gmra.mrb[14].mxu1 %vm178_vm2, %v884_v22  ;;  %v4150_v22 = vpack.c.bf16 %v1643_v21, %v1642_v19 }
 0x48c   :  { %3943 = vmatpush3.msra.mxu1 %v1270_v11  ;;  %3944 = vmatprep.mubr.msk.f32.mxu1 %vm4374_vm1, %v4373_v27 }
 0x48d   :  { %v4251_v24 = vpop.eup %4250  ;;  %v872_v34 = vpop.xlane.xlu1 %871  ;;  %3952 = vmatprep.subr.mxu1 %v4373_v27 }
 0x48e   :  { %v883_v35 = vmul.f32 %v4251_v24, %v4235_v60  ;;  %4258 = vrcp.f32 %v872_v34  ;;  %v1422_v29 = vpop.permute.xlu0 %1421 }
 0x490   :  { %v4253_v36 = vpop.eup %4252  ;;  %3930 = vmatmul.mubr.msk.f32.vlgmr.msra.gmra.mrb[8].mxu0 %vm178_vm2, %v883_v35 }
 0x491   :  { %v4255_v37 = vpop.eup %4254  ;;  %v886_v25 = vmul.f32 %v4253_v36, %v4237_v63  ;;  %3938 = vmatpush3.msra.mxu0 %v1194_v12  ;;  %3939 = vmatprep.mubr.msk.f32.mxu0 %vm4374_vm1, %v4373_v27  ;;  %v1346_v26 = vpop.permute.xlu1 %1345 }
 0x492   :  { %v885_v38 = vmul.f32 %v4255_v37, %v4239_v2  ;;  %3947 = vmatprep.subr.mxu0 %v4373_v27 }
 0x493   :  { %3945 = vmatmul.mubr.msk.f32.vlgmr.msra.gmra.mrb[16].mxu1 %vm178_vm2, %v886_v25 }
 0x494   :  { %3940 = vmatmul.mubr.msk.f32.vlgmr.msra.gmra.mrb[10].mxu0 %vm178_vm2, %v885_v38  ;;  %3953 = vmatpush3.msra.mxu1 %v1422_v29 }
 0x495   :  { %v4257_v28 = vpop.eup %4256  ;;  %3948 = vmatpush3.msra.mxu0 %v1346_v26  ;;  %3949 = vmatprep.mubr.msk.f32.mxu0 %vm4374_vm1, %v4373_v27  ;;  %v3681_v26 = vld [vmem:[%s5054_s6] ss:$0 sm:$0xff] }
 0x496   :  { %v887_v30 = vmul.f32 %v4257_v28, %v4608_v5  ;;  %3954 = vmatprep.mubr.msk.f32.mxu1 %vm4374_vm1, %v4373_v27  ;;  %4139 = vmatprep.subr.bf16.mxu0 %v4138_v46 }
 0x498   :  { %v4259_v31 = vpop.eup %4258  ;;  %3950 = vmatmul.mubr.msk.f32.vlgmr.msra.gmra.mrb[12].mxu0 %vm178_vm2, %v887_v30 }
 0x499   :  { %v888_v39 = vmul.f32 %v4259_v31, %v4612_v7  ;;  %4141 = vmatpush3.bf16.msra.mxu0 %v4138_v46  ;;  %v1754_v46 = vld [vmem:[%s5052_s4 + $0x28] sm:$0xff] }
 0x49a   :  { %4143 = vmatprep.subr.bf16.mxu0 %v4142_v52 }
 0x49b   :  { %3955 = vmatmul.mubr.msk.f32.vlgmr.msra.gmra.mrb[18].mxu1 %vm178_vm2, %v888_v39  ;;  %v1749_v39 = vld [vmem:[%s5052_s4] sm:$0xff] }
 0x49d   :  { %4145 = vmatpush3.bf16.msra.mxu0 %v4142_v52 }
 0x50a   :  { %v961_v40 = vpop.f32.mrb[6].mxu0 }
 0x50b   :  { %v3921_v41 = vpop.f32.mrb[7].mxu0 }
 0x50c   :  { %v1751_v41 = vld [vmem:[%s5052_s4 + $0x10] sm:$0xff] }
 0x50d   :  { %v1037_v42 = vpop.f32.mrb[12].mxu1 }
 0x50e   :  { %v3926_v43 = vpop.f32.mrb[13].mxu1 }
 0x50f   :  { %v1752_v43 = vld [vmem:[%s5052_s4 + $0x18] sm:$0xff] }
 0x510   :  { %v4158_v44 = vpack.c.bf16 %v1752_v43, %v1751_v41 }
 0x55e   :  { %v1189_v48 = vpop.f32.mrb[14].mxu1 }
 0x55f   :  { %1501 = vrot.lane.b32.xlu0 %v1189_v48, %s4370_s12  ;;  %v3936_v51 = vpop.f32.mrb[15].mxu1  ;;  %v4162_v48 = vpack.c.bf16 %v1754_v46, %v1753_v45 }
 0x560   :  { %v4166_v51 = vpack.c.bf16 %v1756_v50, %v1755_v49 }
 0x563   :  { %v1113_v53 = vpop.f32.mrb[8].mxu0 }
 0x564   :  { %1499 = vrot.lane.b32.xlu1 %v1113_v53, %s4370_s12  ;;  %v3931_v54 = vpop.f32.mrb[9].mxu0 }
 0x566   :  { %v1341_v55 = vpop.f32.mrb[16].mxu1 }
 0x567   :  { %v1265_v56 = vpop.f32.mrb[10].mxu0  ;;  %1509 = vrot.lane.b32.xlu0 %v1341_v55, %s4379_s15  ;;  %v3946_v57 = vpop.f32.mrb[17].mxu1 }
 0x568   :  { %1507 = vrot.lane.b32.xlu1 %v1265_v56, %s4379_s15  ;;  %v3941_v58 = vpop.f32.mrb[11].mxu0 }
 0x56b   :  { %v1417_v59 = vpop.f32.mrb[12].mxu0 }
 0x56c   :  { %1515 = vrot.lane.b32.xlu1 %v1417_v59, %s4380_s16  ;;  %v3951_v60 = vpop.f32.mrb[13].mxu0 }
 0x56e   :  { %v1493_v61 = vpop.f32.mrb[18].mxu1 }
 0x56f   :  { %1517 = vrot.lane.b32.xlu0 %v1493_v61, %s4380_s16  ;;  %v3956_v62 = vpop.f32.mrb[19].mxu1 }
 0x5d1   :  { %v1502_v2 = vpop.permute.xlu0 %1501 }
 0x5d2   :  { %v1522_v9 = vsel %vm178_vm2, %v1037_v42, %v1502_v2 }
 0x5d6   :  { %v1500_v63 = vpop.permute.xlu1 %1499 }
 0x5d7   :  { %v1521_v4 = vsel %vm178_vm2, %v961_v40, %v1500_v63  ;;  %v1750_v40 = vld [vmem:[%s5052_s4 + $0x8] sm:$0xff] }
 0x5d8   :  { %v4154_v42 = vpack.c.bf16 %v1750_v40, %v1749_v39 }
 0x5d9   :  { %v1510_v5 = vpop.permute.xlu0 %1509 }
 0x5da   :  { %v1508_v3 = vpop.permute.xlu1 %1507  ;;  %v1525_v10 = vsel %vm1523_vm4, %v1522_v9, %v1510_v5  ;;  %4155 = vmatprep.subr.bf16.mxu0 %v4154_v42 }
 0x5db   :  { %v1524_v6 = vsel %vm1523_vm4, %v1521_v4, %v1508_v3 }
 0x5de   :  { %v1516_v7 = vpop.permute.xlu1 %1515 }
 0x5df   :  { %v1527_v8 = vsel %vm1526_vm5, %v1524_v6, %v1516_v7 }
 0x5e0   :  { %3965 = vmatprep.mubr.msk.f32.mxu0 %vm53_vm0, %v1527_v8 }
 0x5e1   :  { %v1518_v11 = vpop.permute.xlu0 %1517 }
 0x5e2   :  { %v1528_v12 = vsel %vm1526_vm5, %v1525_v10, %v1518_v11 }
 0x5e3   :  { %3966 = vmatmul.mubr.msk.f32.vlgmr.msra.gmra.mrb[14].mxu0 %vm53_vm0, %v1528_v12 }
 0x5e4   :  { %4157 = vmatpush3.bf16.msra.mxu0 %v4154_v42 }
 0x5e5   :  { %4159 = vmatprep.subr.bf16.mxu0 %v4158_v44 }
 0x5e8   :  { %4161 = vmatpush3.bf16.msra.mxu0 %v4158_v44 }
 0x5e9   :  { %4163 = vmatprep.subr.bf16.mxu0 %v4162_v48 }
 0x5ec   :  { %4165 = vmatpush3.bf16.msra.mxu0 %v4162_v48 }
 0x5ed   :  { %4167 = vmatprep.subr.bf16.mxu0 %v4166_v51 }
 0x5f0   :  { %4169 = vmatpush3.bf16.msra.mxu0 %v4166_v51 }
 0x5f1   :  { %4019 = vmatprep.subr.mxu0 %v4373_v27 }
 0x6b6   :  { %v3967_v13 = vpop.f32.mrb[14].mxu0 }
 0x6b7   :  { %v4675_v14 = vadd.f32 %v3967_v13, %v4439_v1  ;;  %v1605_v15 = vpop.f32.mrb[15].mxu0  ;;  %v1640_v1 = vld [vmem:[%s5051_s3] sm:$0xff] }
 0x6b8   :  { %v4678_v16 = vadd.f32 %v1605_v15, %v4437_v0  ;;  %v1641_v0 = vld [vmem:[%s5051_s3 + $0x8] sm:$0xff] }
 0x6b9   :  { %v1617_v17 = vmul.f32 %v4675_v14, %v4675_v14  ;;  %v4146_v20 = vpack.c.bf16 %v1641_v0, %v1640_v1  ;;  %v3692_v15 = vld [vmem:[%s5049_s1 + $0x28] sm:$0xff] }
 0x6ba   :  { %v1616_v18 = vmul.f32 %v4678_v16, %v4678_v16 }
 0x6bb   :  { %v1621_v32 = vsel %vm53_vm0, %v1617_v17, 0.0  ;;  %4147 = vmatprep.subr.bf16.mxu1 %v4146_v20 }
 0x6bc   :  { %1622 = vadd.xlane.f32.xlu0 %v1621_v32  ;;  %v1618_v33 = vsel %vm53_vm0, %v1616_v18, 0.0  ;;  %4149 = vmatpush3.bf16.msra.mxu1 %v4146_v20  ;;  %v3694_v18 = vld [vmem:[%s5049_s1 + $0x38] sm:$0xff] }
 0x6bd   :  { %1619 = vadd.xlane.f32.xlu1 %v1618_v33  ;;  %4151 = vmatprep.subr.bf16.mxu1 %v4150_v22 }
 0x6c0   :  { %4153 = vmatpush3.bf16.msra.mxu1 %v4150_v22 }
 0x749   :  { %v1623_v23 = vpop.xlane.xlu0 %1622 }
 0x74a   :  { %v1625_v24 = vmul.f32 0.03125, %v1623_v23  ;;  %v1620_v34 = vpop.xlane.xlu1 %1619 }
 0x74b   :  { %v1624_v35 = vmul.f32 0.03125, %v1620_v34 }
 0x74c   :  { %v1627_v36 = vadd.f32 1e-06, %v1625_v24  ;;  %v3690_v24 = vld [vmem:[%s5053_s5 + $0x1] ss:$0 sm:$0xff] }
 0x74d   :  { %v1626_v37 = vadd.f32 1e-06, %v1624_v35 }
 0x74e   :  { %4260 = vrsqrt.f32 %v1627_v36 }
 0x74f   :  { %4262 = vrsqrt.f32 %v1626_v37 }
 0x758   :  { %v4261_v25 = vpop.eup %4260 }
 0x759   :  { %v4263_v38 = vpop.eup %4262  ;;  %v1631_v29 = vmul.f32 %v4261_v25, %v4675_v14 }
 0x75a   :  { %v1630_v28 = vmul.f32 %v4263_v38, %v4678_v16 }
 0x75b   :  { %v1639_v31 = vmul.f32 %v3681_v26, %v1631_v29 }
 0x75c   :  { %v1638_v30 = vmul.f32 %v3681_v26, %v1630_v28 }
 0x75e   :  { %3976 = vmatprep.mubr.msk.f32.mxu1 %vm53_vm0, %v1638_v30 }
 0x75f   :  { %3977 = vmatmul.mubr.msk.f32.vlgmr.msra.gmra.mrb[20].mxu1 %vm53_vm0, %v1639_v31 }
 0x832   :  { %v3978_v52 = vpop.f32.mrb[20].mxu1 }
 0x833   :  { %1743 = vrot.lane.b32.xlu1 %v3978_v52, %s4378_s28  ;;  %v1716_v53 = vpop.f32.mrb[21].mxu1  ;;  %v3685_v55 = vmul.f32 -1.442695, %v3978_v52 }
 0x834   :  { %1741 = vrot.lane.b32.xlu0 %v1716_v53, %s4378_s28  ;;  %v3684_v54 = vmul.f32 -1.442695, %v1716_v53 }
 0x836   :  { %4264 = vpow2.f32 %v3684_v54 }
 0x837   :  { %4266 = vpow2.f32 %v3685_v55 }
 0x840   :  { %v4265_v56 = vpop.eup %4264 }
 0x841   :  { %v4267_v57 = vpop.eup %4266  ;;  %v1731_v58 = vadd.f32 1.0, %v4265_v56 }
 0x842   :  { %v1732_v59 = vadd.f32 1.0, %v4267_v57 }
 0x843   :  { %4268 = vrcp.f32 %v1731_v58 }
 0x844   :  { %4270 = vrcp.f32 %v1732_v59 }
 0x84d   :  { %v4269_v60 = vpop.eup %4268 }
 0x84e   :  { %v4271_v61 = vpop.eup %4270  ;;  %v1737_v63 = vmul.f32 %v4269_v60, %v1716_v53 }
 0x84f   :  { %v1738_v2 = vmul.f32 %v4271_v61, %v3978_v52 }
 0x8a5   :  { %v1744_v62 = vpop.permute.xlu1 %1743 }
 0x8a6   :  { %v1742_v3 = vpop.permute.xlu0 %1741  ;;  %v1748_v5 = vmul.f32 %v1744_v62, %v1738_v2 }
 0x8a7   :  { %v1747_v4 = vmul.f32 %v1742_v3, %v1737_v63 }
 0x8a9   :  { %3995 = vmatprep.mubr.msk.f32.mxu0 %vm1757_vm6, %v1747_v4 }
 0x8aa   :  { %3996 = vmatmul.mubr.msk.f32.vlgmr.msra.gmra.mrb[16].mxu0 %vm1757_vm6, %v1748_v5 }
 0x8ab   :  { %4021 = vmatprep.mubr.msk.f32.mxu0 %vm4374_vm1, %v4373_v27 }
 0x97d   :  { %v3997_v6 = vpop.f32.mrb[16].mxu0 }
 0x97e   :  { %v4737_v7 = vadd.f32 %v3997_v6, %v4675_v14  ;;  %v1830_v8 = vpop.f32.mrb[17].mxu0  ;;  %v3691_v14 = vld [vmem:[%s5049_s1 + $0x20] sm:$0xff] }
 0x97f   :  { %v4740_v9 = vadd.f32 %v1830_v8, %v4678_v16  ;;  %v3693_v16 = vld [vmem:[%s5049_s1 + $0x30] sm:$0xff]  ;;  %v4170_v17 = vpack.c.bf16 %v3692_v15, %v3691_v14 }
 0x980   :  { %v1846_v10 = vmul.f32 %v4737_v7, %v4737_v7  ;;  %v4174_v32 = vpack.c.bf16 %v3694_v18, %v3693_v16 }
 0x981   :  { %v1845_v11 = vmul.f32 %v4740_v9, %v4740_v9  ;;  %4171 = vmatprep.subr.bf16.mxu1 %v4170_v17 }
 0x982   :  { %v1850_v12 = vsel %vm53_vm0, %v1846_v10, 0.0  ;;  %4173 = vmatpush3.bf16.msra.mxu1 %v4170_v17 }
 0x983   :  { %1851 = vadd.xlane.f32.xlu0 %v1850_v12  ;;  %v1847_v13 = vsel %vm53_vm0, %v1845_v11, 0.0  ;;  %4175 = vmatprep.subr.bf16.mxu1 %v4174_v32 }
 0x984   :  { %1848 = vadd.xlane.f32.xlu1 %v1847_v13 }
 0x986   :  { %4177 = vmatpush3.bf16.msra.mxu1 %v4174_v32 }
 0x987   :  { %4009 = vmatprep.subr.mxu1 %v4373_v27 }
 0xa10   :  { %v1852_v33 = vpop.xlane.xlu0 %1851 }
 0xa11   :  { %v1854_v1 = vmul.f32 0.03125, %v1852_v33  ;;  %v1849_v0 = vpop.xlane.xlu1 %1848 }
 0xa12   :  { %v1853_v19 = vmul.f32 0.03125, %v1849_v0 }
 0xa13   :  { %v1856_v20 = vadd.f32 1e-06, %v1854_v1 }
 0xa14   :  { %v1855_v21 = vadd.f32 1e-06, %v1853_v19 }
 0xa15   :  { %4272 = vrsqrt.f32 %v1856_v20 }
 0xa16   :  { %4274 = vrsqrt.f32 %v1855_v21 }
 0xa1f   :  { %v4273_v22 = vpop.eup %4272 }
 0xa20   :  { %v4275_v23 = vpop.eup %4274  ;;  %v1860_v34 = vmul.f32 %v4273_v22, %v4737_v7 }
 0xa21   :  { %v1859_v35 = vmul.f32 %v4275_v23, %v4740_v9 }
 0xa22   :  { %v1868_v37 = vmul.f32 %v3690_v24, %v1860_v34 }
 0xa23   :  { %v1867_v36 = vmul.f32 %v3690_v24, %v1859_v35 }
 0xa25   :  { %4006 = vmatprep.mubr.msk.f32.mxu1 %vm53_vm0, %v1867_v36 }
 0xa26   :  { %4007 = vmatmul.mubr.msk.f32.vlgmr.msra.gmra.mrb[22].mxu1 %vm53_vm0, %v1868_v37 }
 0xa27   :  { %4011 = vmatprep.mubr.msk.f32.mxu1 %vm4374_vm1, %v4373_v27 }
 0xaf9   :  { %v4770_v25 = vpop.f32.mrb[22].mxu1 }
 0xafa   :  { %1959 = vrot.lane.b32.xlu1 %v4770_v25, %s4371_s24  ;;  %v4774_v38 = vpop.f32.mrb[23].mxu1 }
 0xafb   :  { %1957 = vrot.lane.b32.xlu0 %v4774_v38, %s4371_s24 }
 0xafe   :  { %1961 = vrot.lane.b32.xlu1 %v4774_v38, %s4372_s25 }
 0xaff   :  { %1963 = vrot.lane.b32.xlu0 %v4770_v25, %s4372_s25 }
 0xb02   :  { %1965 = vrot.lane.b32.xlu1 %v4774_v38, %s4375_s26 }
 0xb03   :  { %1967 = vrot.lane.b32.xlu0 %v4770_v25, %s4375_s26 }
 0xb06   :  { %1969 = vrot.lane.b32.xlu1 %v4774_v38, %s4376_s27 }
 0xb07   :  { %2045 = vrot.lane.b32.xlu0 %v4770_v25, %s4376_s27 }
 0xb6c   :  { %v4790_v26 = vpop.permute.xlu1 %1959 }
 0xb6d   :  { %2197 = vrot.lane.b32.xlu0 %v4790_v26, %s4376_s27  ;;  %v4794_v29 = vpop.permute.xlu0 %1957 }
 0xb6e   :  { %2121 = vrot.lane.b32.xlu1 %v4794_v29, %s4376_s27 }
 0xb70   :  { %v4798_v28 = vpop.permute.xlu1 %1961 }
 0xb71   :  { %v4800_v30 = vpop.permute.xlu0 %1963 }
 0xb72   :  { %2273 = vrot.lane.b32.xlu1 %v4798_v28, %s4376_s27  ;;  %2349 = vrot.lane.b32.xlu0 %v4800_v30, %s4376_s27 }
 0xb74   :  { %v4806_v31 = vpop.permute.xlu1 %1965 }
 0xb75   :  { %v4808_v39 = vpop.permute.xlu0 %1967 }
 0xb76   :  { %2425 = vrot.lane.b32.xlu1 %v4806_v31, %s4376_s27  ;;  %2501 = vrot.lane.b32.xlu0 %v4808_v39, %s4376_s27 }
 0xb78   :  { %v1970_v40 = vpop.permute.xlu1 %1969 }
 0xb79   :  { %4010 = vmatpush3.xpose.msk.msra.mxu1 %vm178_vm2, %v1970_v40  ;;  %v2046_v41 = vpop.permute.xlu0 %2045 }
 0xb7a   :  { %4014 = vmatprep.subr.mxu1 %v4373_v27 }
 0xb7c   :  { %4012 = vmatmul.mubr.msk.f32.vlgmr.msra.gmra.mrb[24].mxu1 %vm178_vm2, %v4774_v38 }
 0xb7d   :  { %4015 = vmatpush3.xpose.msk.msra.mxu1 %vm178_vm2, %v2046_v41  ;;  %4016 = vmatprep.mubr.msk.f32.mxu1 %vm4374_vm1, %v4373_v27 }
 0xb7e   :  { %4024 = vmatprep.subr.mxu1 %v4373_v27 }
 0xb80   :  { %4017 = vmatmul.mubr.msk.f32.vlgmr.msra.gmra.mrb[26].mxu1 %vm178_vm2, %v4770_v25 }
 0xb81   :  { %4026 = vmatprep.mubr.msk.f32.mxu1 %vm4374_vm1, %v4373_v27 }
 0xbdf   :  { %v2198_v42 = vpop.permute.xlu0 %2197 }
 0xbe0   :  { %v2122_v43 = vpop.permute.xlu1 %2121  ;;  %4025 = vmatpush3.xpose.msk.msra.mxu1 %vm178_vm2, %v2198_v42 }
 0xbe1   :  { %4020 = vmatpush3.xpose.msk.msra.mxu0 %vm178_vm2, %v2122_v43  ;;  %4034 = vmatprep.subr.mxu1 %v4373_v27 }
 0xbe2   :  { %4029 = vmatprep.subr.mxu0 %v4373_v27 }
 0xbe3   :  { %4027 = vmatmul.mubr.msk.f32.vlgmr.msra.gmra.mrb[28].mxu1 %vm178_vm2, %v4790_v26 }
 0xbe4   :  { %4022 = vmatmul.mubr.msk.f32.vlgmr.msra.gmra.mrb[18].mxu0 %vm178_vm2, %v4794_v29  ;;  %v2274_v44 = vpop.permute.xlu1 %2273  ;;  %v2350_v45 = vpop.permute.xlu0 %2349  ;;  %4036 = vmatprep.mubr.msk.f32.mxu1 %vm4374_vm1, %v4373_v27 }
 0xbe5   :  { %4030 = vmatpush3.xpose.msk.msra.mxu0 %vm178_vm2, %v2274_v44  ;;  %4035 = vmatpush3.xpose.msk.msra.mxu1 %vm178_vm2, %v2350_v45 }
 0xbe6   :  { %4031 = vmatprep.mubr.msk.f32.mxu0 %vm4374_vm1, %v4373_v27  ;;  %4039 = vmatprep.subr.mxu0 %v4373_v27 }
 0xbe7   :  { %4044 = vmatprep.subr.mxu1 %v4373_v27 }
 0xbe8   :  { %4032 = vmatmul.mubr.msk.f32.vlgmr.msra.gmra.mrb[20].mxu0 %vm178_vm2, %v4798_v28  ;;  %v2426_v46 = vpop.permute.xlu1 %2425  ;;  %4037 = vmatmul.mubr.msk.f32.vlgmr.msra.gmra.mrb[30].mxu1 %vm178_vm2, %v4800_v30  ;;  %v2502_v48 = vpop.permute.xlu0 %2501 }
 0xbe9   :  { %4040 = vmatpush3.xpose.msk.msra.mxu0 %vm178_vm2, %v2426_v46  ;;  %4045 = vmatpush3.xpose.msk.msra.mxu1 %vm178_vm2, %v2502_v48 }
 0xbea   :  { %4041 = vmatprep.mubr.msk.f32.mxu0 %vm4374_vm1, %v4373_v27  ;;  %4046 = vmatprep.mubr.msk.f32.mxu1 %vm4374_vm1, %v4373_v27 }
 0xbeb   :  { %4049 = vmatprep.subr.mxu0 %v4373_v27  ;;  %4054 = vmatprep.subr.mxu1 %v4373_v27 }
 0xbec   :  { %4042 = vmatmul.mubr.msk.f32.vlgmr.msra.gmra.mrb[22].mxu0 %vm178_vm2, %v4806_v31  ;;  %4047 = vmatmul.mubr.msk.f32.vlgmr.msra.gmra.mrb[32].mxu1 %vm178_vm2, %v4808_v39 }
 0xbed   :  { %4051 = vmatprep.mubr.msk.f32.mxu0 %vm4374_vm1, %v4373_v27  ;;  %4056 = vmatprep.mubr.msk.f32.mxu1 %vm4374_vm1, %v4373_v27 }
 0xc4f   :  { %v2041_v49 = vpop.f32.mrb[24].mxu1 }
 0xc50   :  { %v2577_v50 = vmul.f32 0.35355338, %v2041_v49  ;;  %v4013_v51 = vpop.f32.mrb[25].mxu1 }
 0xc52   :  { %v2585_v52 = vadd.f32 %v2577_v50, %v4564_v47 }
 0xc53   :  { %v2117_v53 = vpop.f32.mrb[26].mxu1 }
 0xc54   :  { %v2578_v54 = vmul.f32 0.35355338, %v2117_v53  ;;  %v4018_v55 = vpop.f32.mrb[27].mxu1  ;;  %v2593_v56 = vsel %vm178_vm2, %v2585_v52, -inf }
 0xc55   :  { %2594 = vmax.xlane.f32.xlu1 %v2593_v56 }
 0xc56   :  { %v2586_v57 = vadd.f32 %v2578_v54, %v4564_v47 }
 0xc58   :  { %v2596_v58 = vsel %vm178_vm2, %v2586_v57, -inf }
 0xc59   :  { %2597 = vmax.xlane.f32.xlu0 %v2596_v58 }
 0xcb6   :  { %v2269_v59 = vpop.f32.mrb[28].mxu1 }
 0xcb7   :  { %v2580_v60 = vmul.f32 0.35355338, %v2269_v59  ;;  %v2193_v61 = vpop.f32.mrb[18].mxu0  ;;  %v4028_v62 = vpop.f32.mrb[29].mxu1 }
 0xcb8   :  { %v2579_v63 = vmul.f32 0.35355338, %v2193_v61  ;;  %v4023_v2 = vpop.f32.mrb[19].mxu0 }
 0xcb9   :  { %v2588_v3 = vadd.f32 %v2580_v60, %v4564_v47 }
 0xcba   :  { %v2587_v4 = vadd.f32 %v2579_v63, %v4564_v47 }
 0xcbb   :  { %v2345_v5 = vpop.f32.mrb[20].mxu0  ;;  %v2421_v6 = vpop.f32.mrb[30].mxu1  ;;  %v2602_v8 = vsel %vm178_vm2, %v2588_v3, -inf }
 0xcbc   :  { %v2581_v10 = vmul.f32 0.35355338, %v2345_v5  ;;  %v2582_v11 = vmul.f32 0.35355338, %v2421_v6  ;;  %v4033_v12 = vpop.f32.mrb[21].mxu0  ;;  %2603 = vmax.xlane.f32.xlu1 %v2602_v8  ;;  %v4038_v13 = vpop.f32.mrb[31].mxu1 }
 0xcbd   :  { %v2599_v14 = vsel %vm178_vm2, %v2587_v4, -inf }
 0xcbe   :  { %2600 = vmax.xlane.f32.xlu0 %v2599_v14  ;;  %v2589_v15 = vadd.f32 %v2581_v10, %v4564_v47  ;;  %v2590_v16 = vadd.f32 %v2582_v11, %v4564_v47 }
 0xcbf   :  { %v2497_v17 = vpop.f32.mrb[22].mxu0  ;;  %v2573_v18 = vpop.f32.mrb[32].mxu1 }
 0xcc0   :  { %v2583_v32 = vmul.f32 0.35355338, %v2497_v17  ;;  %v2584_v33 = vmul.f32 0.35355338, %v2573_v18  ;;  %v4043_v1 = vpop.f32.mrb[23].mxu0  ;;  %v4048_v0 = vpop.f32.mrb[33].mxu1 }
 0xcc1   :  { %v2605_v19 = vsel %vm178_vm2, %v2589_v15, -inf  ;;  %v2608_v20 = vsel %vm178_vm2, %v2590_v16, -inf }
 0xcc2   :  { %2606 = vmax.xlane.f32.xlu0 %v2605_v19  ;;  %2609 = vmax.xlane.f32.xlu1 %v2608_v20  ;;  %v2591_v21 = vadd.f32 %v2583_v32, %v4564_v47  ;;  %v2592_v22 = vadd.f32 %v2584_v33, %v4564_v47 }
 0xcc4   :  { %v2611_v23 = vsel %vm178_vm2, %v2591_v21, -inf  ;;  %v2614_v24 = vsel %vm178_vm2, %v2592_v22, -inf }
 0xcc6   :  { %2612 = vmax.xlane.f32.xlu0 %v2611_v23  ;;  %2615 = vmax.xlane.f32.xlu1 %v2614_v24 }
 0xcd7   :  { %2757 = vrot.lane.b32.xlu1 %v4770_v25, %s4378_s28 }
 0xcdb   :  { %2833 = vrot.lane.b32.xlu1 %v4794_v29, %s4378_s28 }
 0xcdc   :  { %2681 = vrot.lane.b32.xlu0 %v4774_v38, %s4378_s28 }
 0xcdf   :  { %2985 = vrot.lane.b32.xlu1 %v4798_v28, %s4378_s28 }
 0xce0   :  { %2909 = vrot.lane.b32.xlu0 %v4790_v26, %s4378_s28 }
 0xce2   :  { %v2595_v47 = vpop.xlane.xlu1 %2594 }
 0xce3   :  { %v2617_v35 = vsub.f32 %v2585_v52, %v2595_v47 }
 0xce4   :  { %3061 = vrot.lane.b32.xlu0 %v4800_v30, %s4378_s28 }
 0xce5   :  { %v2625_v37 = vmul.f32 1.442695, %v2617_v35 }
 0xce6   :  { %v2598_v34 = vpop.xlane.xlu0 %2597 }
 0xce7   :  { %v2618_v36 = vsub.f32 %v2586_v57, %v2598_v34  ;;  %4276 = vpow2.f32 %v2625_v37 }
 0xce9   :  { %v2627_v25 = vmul.f32 1.442695, %v2618_v36 }
 0xceb   :  { %4278 = vpow2.f32 %v2627_v25 }
 0xcf1   :  { %v4890_v29 = vpop.eup %4276 }
 0xcf2   :  { %v2641_v28 = vsel %vm178_vm2, %v4890_v29, 0.0 }
 0xcf5   :  { %v4892_v38 = vpop.eup %4278 }
 0xcf6   :  { %v2644_v26 = vsel %vm178_vm2, %v4892_v38, 0.0 }
 0xd03   :  { %2642 = vadd.xlane.f32.xlu0 %v2641_v28  ;;  %2645 = vadd.xlane.f32.xlu1 %v2644_v26 }
 0xd49   :  { %v2604_v30 = vpop.xlane.xlu1 %2603 }
 0xd4a   :  { %v2620_v40 = vsub.f32 %v2588_v3, %v2604_v30 }
 0xd4b   :  { %v2601_v41 = vpop.xlane.xlu0 %2600 }
 0xd4c   :  { %v2631_v42 = vmul.f32 1.442695, %v2620_v40  ;;  %v2619_v43 = vsub.f32 %v2587_v4, %v2601_v41 }
 0xd4e   :  { %4280 = vpow2.f32 %v2631_v42  ;;  %v2629_v44 = vmul.f32 1.442695, %v2619_v43 }
 0xd4f   :  { %v2610_v45 = vpop.xlane.xlu1 %2609  ;;  %v2607_v46 = vpop.xlane.xlu0 %2606 }
 0xd50   :  { %4282 = vpow2.f32 %v2629_v44  ;;  %v2622_v48 = vsub.f32 %v2590_v16, %v2610_v45  ;;  %v2621_v49 = vsub.f32 %v2589_v15, %v2607_v46  ;;  %v3721_v44 = vld [vmem:[%s5050_s2 + $0x20] sm:$0xff]  ;;  %v3722_v45 = vld [vmem:[%s5050_s2 + $0x28] sm:$0xff] }
 0xd51   :  { %v4178_v46 = vpack.c.bf16 %v3722_v45, %v3721_v44  ;;  %v3741_v44 = vld [vmem:[%s5052_s4 + $0x68] sm:$0xff] }
 0xd52   :  { %v2635_v50 = vmul.f32 1.442695, %v2622_v48  ;;  %v2633_v51 = vmul.f32 1.442695, %v2621_v49  ;;  %v3724_v48 = vld [vmem:[%s5050_s2 + $0x38] sm:$0xff] }
 0xd53   :  { %v2616_v52 = vpop.xlane.xlu1 %2615  ;;  %v2613_v53 = vpop.xlane.xlu0 %2612 }
 0xd54   :  { %4284 = vpow2.f32 %v2635_v50  ;;  %v2624_v54 = vsub.f32 %v2592_v22, %v2616_v52  ;;  %v2623_v55 = vsub.f32 %v2591_v21, %v2613_v53 }
 0xd55   :  { %4286 = vpow2.f32 %v2633_v51 }
 0xd56   :  { %v2639_v56 = vmul.f32 1.442695, %v2624_v54  ;;  %v2637_v57 = vmul.f32 1.442695, %v2623_v55 }
 0xd57   :  { %v2758_v58 = vpop.permute.xlu1 %2757  ;;  %v2682_v59 = vpop.permute.xlu0 %2681 }
 0xd58   :  { %v4281_v60 = vpop.eup %4280  ;;  %4288 = vpow2.f32 %v2639_v56  ;;  %4050 = vmatpush3.msra.mxu0 %v2682_v59  ;;  %4055 = vmatpush3.msra.mxu1 %v2758_v58 }
 0xd59   :  { %4290 = vpow2.f32 %v2637_v57  ;;  %v2650_v61 = vsel %vm178_vm2, %v4281_v60, 0.0  ;;  %4059 = vmatprep.subr.mxu0 %v4373_v27  ;;  %4064 = vmatprep.subr.mxu1 %v4373_v27 }
 0xd5a   :  { %v4283_v62 = vpop.eup %4282  ;;  %2651 = vadd.xlane.f32.xlu1 %v2650_v61 }
 0xd5b   :  { %v2647_v63 = vsel %vm178_vm2, %v4283_v62, 0.0  ;;  %v2834_v12 = vpop.permute.xlu1 %2833  ;;  %v2910_v13 = vpop.permute.xlu0 %2909 }
 0xd5c   :  { %2648 = vadd.xlane.f32.xlu0 %v2647_v63 }
 0xd5e   :  { %v4285_v2 = vpop.eup %4284 }
 0xd5f   :  { %v4287_v3 = vpop.eup %4286  ;;  %v2656_v4 = vsel %vm178_vm2, %v4285_v2, 0.0  ;;  %v2986_v14 = vpop.permute.xlu1 %2985 }
 0xd60   :  { %2657 = vadd.xlane.f32.xlu1 %v2656_v4  ;;  %v2653_v5 = vsel %vm178_vm2, %v4287_v3, 0.0  ;;  %v3062_v15 = vpop.permute.xlu0 %3061 }
 0xd61   :  { %2654 = vadd.xlane.f32.xlu0 %v2653_v5 }
 0xd62   :  { %v4904_v6 = vpop.eup %4288 }
 0xd63   :  { %v4906_v8 = vpop.eup %4290  ;;  %v2662_v10 = vsel %vm178_vm2, %v4904_v6, 0.0 }
 0xd64   :  { %2663 = vadd.xlane.f32.xlu1 %v2662_v10  ;;  %v2659_v11 = vsel %vm178_vm2, %v4906_v8, 0.0 }
 0xd65   :  { %2660 = vadd.xlane.f32.xlu0 %v2659_v11 }
 0xd75   :  { %3137 = vrot.lane.b32.xlu1 %v4806_v31, %s4378_s28 }
 0xd7b   :  { %3213 = vrot.lane.b32.xlu0 %v4808_v39, %s4378_s28 }
 0xd90   :  { %v2646_v16 = vpop.xlane.xlu1 %2645  ;;  %v2643_v17 = vpop.xlane.xlu0 %2642 }
 0xd91   :  { %4292 = vrcp.f32 %v2646_v16 }
 0xd92   :  { %4294 = vrcp.f32 %v2643_v17 }
 0xd9b   :  { %v4293_v18 = vpop.eup %4292 }
 0xd9c   :  { %v4295_v32 = vpop.eup %4294  ;;  %v2674_v33 = vmul.f32 %v4293_v18, %v4892_v38 }
 0xd9d   :  { %v2673_v1 = vmul.f32 %v4295_v32, %v4890_v29 }
 0xd9e   :  { %4057 = vmatmul.mubr.msk.f32.vlgmr.msra.gmra.mrb[34].mxu1 %vm178_vm2, %v2674_v33 }
 0xd9f   :  { %4052 = vmatmul.mubr.msk.f32.vlgmr.msra.gmra.mrb[24].mxu0 %vm178_vm2, %v2673_v1  ;;  %4065 = vmatpush3.msra.mxu1 %v2910_v13 }
 0xda0   :  { %4060 = vmatpush3.msra.mxu0 %v2834_v12  ;;  %4066 = vmatprep.mubr.msk.f32.mxu1 %vm4374_vm1, %v4373_v27 }
 0xda1   :  { %4074 = vmatprep.subr.mxu1 %v4373_v27  ;;  %4061 = vmatprep.mubr.msk.f32.mxu0 %vm4374_vm1, %v4373_v27 }
 0xda2   :  { %4069 = vmatprep.subr.mxu0 %v4373_v27 }
 0xde7   :  { %v2652_v31 = vpop.xlane.xlu1 %2651 }
 0xde8   :  { %4296 = vrcp.f32 %v2652_v31  ;;  %v3730_v31 = vld [vmem:[%s5051_s3 + $0x30] sm:$0xff] }
 0xde9   :  { %v2649_v39 = vpop.xlane.xlu0 %2648 }
 0xdea   :  { %4298 = vrcp.f32 %v2649_v39 }
 0xded   :  { %v2658_v0 = vpop.xlane.xlu1 %2657 }
 0xdee   :  { %4300 = vrcp.f32 %v2658_v0  ;;  %v2655_v19 = vpop.xlane.xlu0 %2654  ;;  %v3731_v0 = vld [vmem:[%s5051_s3 + $0x38] sm:$0xff] }
 0xdef   :  { %4302 = vrcp.f32 %v2655_v19  ;;  %v4190_v19 = vpack.c.bf16 %v3731_v0, %v3730_v31 }
 0xdf1   :  { %v2664_v20 = vpop.xlane.xlu1 %2663 }
 0xdf2   :  { %v4297_v21 = vpop.eup %4296  ;;  %4304 = vrcp.f32 %v2664_v20  ;;  %v2661_v22 = vpop.xlane.xlu0 %2660 }
 0xdf3   :  { %v2676_v23 = vmul.f32 %v4297_v21, %v4281_v60  ;;  %4306 = vrcp.f32 %v2661_v22 }
 0xdf4   :  { %v4299_v24 = vpop.eup %4298 }
 0xdf5   :  { %v2675_v47 = vmul.f32 %v4299_v24, %v4283_v62  ;;  %4067 = vmatmul.mubr.msk.f32.vlgmr.msra.gmra.mrb[36].mxu1 %vm178_vm2, %v2676_v23  ;;  %v3138_v38 = vpop.permute.xlu1 %3137 }
 0xdf6   :  { %4075 = vmatpush3.msra.mxu1 %v3062_v15  ;;  %4076 = vmatprep.mubr.msk.f32.mxu1 %vm4374_vm1, %v4373_v27  ;;  %v3214_v25 = vpop.permute.xlu0 %3213 }
 0xdf7   :  { %4062 = vmatmul.mubr.msk.f32.vlgmr.msra.gmra.mrb[26].mxu0 %vm178_vm2, %v2675_v47  ;;  %4084 = vmatprep.subr.mxu1 %v4373_v27 }
 0xdf8   :  { %v4301_v34 = vpop.eup %4300  ;;  %4070 = vmatpush3.msra.mxu0 %v2986_v14  ;;  %4071 = vmatprep.mubr.msk.f32.mxu0 %vm4374_vm1, %v4373_v27 }
 0xdf9   :  { %v4303_v35 = vpop.eup %4302  ;;  %v2678_v36 = vmul.f32 %v4301_v34, %v4285_v2  ;;  %4079 = vmatprep.subr.mxu0 %v4373_v27 }
 0xdfa   :  { %v2677_v37 = vmul.f32 %v4303_v35, %v4287_v3 }
 0xdfb   :  { %4077 = vmatmul.mubr.msk.f32.vlgmr.msra.gmra.mrb[38].mxu1 %vm178_vm2, %v2678_v36  ;;  %v3727_v36 = vld [vmem:[%s5054_s6 + $0x1] ss:$0 sm:$0xff] }
 0xdfc   :  { %v4305_v29 = vpop.eup %4304  ;;  %4072 = vmatmul.mubr.msk.f32.vlgmr.msra.gmra.mrb[28].mxu0 %vm178_vm2, %v2677_v37  ;;  %4085 = vmatpush3.msra.mxu1 %v3214_v25 }
 0xdfd   :  { %v4307_v28 = vpop.eup %4306  ;;  %v2680_v26 = vmul.f32 %v4305_v29, %v4904_v6  ;;  %4080 = vmatpush3.msra.mxu0 %v3138_v38  ;;  %4081 = vmatprep.mubr.msk.f32.mxu0 %vm4374_vm1, %v4373_v27 }
 0xdfe   :  { %v2679_v30 = vmul.f32 %v4307_v28, %v4906_v8  ;;  %4086 = vmatprep.mubr.msk.f32.mxu1 %vm4374_vm1, %v4373_v27  ;;  %4179 = vmatprep.subr.bf16.mxu0 %v4178_v46  ;;  %v3723_v27 = vld [vmem:[%s5050_s2 + $0x30] sm:$0xff]  ;;  %v3736_v28 = vld [vmem:[%s5052_s4 + $0x40] sm:$0xff] }
 0xdff   :  { %4087 = vmatmul.mubr.msk.f32.vlgmr.msra.gmra.mrb[40].mxu1 %vm178_vm2, %v2680_v26  ;;  %v4182_v49 = vpack.c.bf16 %v3724_v48, %v3723_v27  ;;  %v3737_v26 = vld [vmem:[%s5052_s4 + $0x48] sm:$0xff]  ;;  %v3743_v27 = vld [vmem:[%s5052_s4 + $0x78] sm:$0xff] }
 0xe00   :  { %4082 = vmatmul.mubr.msk.f32.vlgmr.msra.gmra.mrb[30].mxu0 %vm178_vm2, %v2679_v30  ;;  %v3738_v30 = vld [vmem:[%s5052_s4 + $0x50] sm:$0xff] }
 0xe01   :  { %4181 = vmatpush3.bf16.msra.mxu0 %v4178_v46  ;;  %v3742_v46 = vld [vmem:[%s5052_s4 + $0x70] sm:$0xff] }
 0xe02   :  { %4183 = vmatprep.subr.bf16.mxu0 %v4182_v49  ;;  %v4206_v48 = vpack.c.bf16 %v3743_v27, %v3742_v46 }
 0xe05   :  { %4185 = vmatpush3.bf16.msra.mxu0 %v4182_v49 }
 0xe71   :  { %v2829_v40 = vpop.f32.mrb[34].mxu1 }
 0xe72   :  { %v2753_v41 = vpop.f32.mrb[24].mxu0  ;;  %v4058_v42 = vpop.f32.mrb[35].mxu1 }
 0xe73   :  { %v4053_v43 = vpop.f32.mrb[25].mxu0 }
 0xe74   :  { %v3740_v43 = vld [vmem:[%s5052_s4 + $0x60] sm:$0xff] }
 0xe75   :  { %v4202_v45 = vpack.c.bf16 %v3741_v44, %v3740_v43 }
 0xec8   :  { %v2981_v50 = vpop.f32.mrb[36].mxu1 }
 0xec9   :  { %3293 = vrot.lane.b32.xlu0 %v2981_v50, %s4370_s12  ;;  %v4068_v51 = vpop.f32.mrb[37].mxu1 }
 0xeca   :  { %v2905_v52 = vpop.f32.mrb[26].mxu0 }
 0xecb   :  { %3291 = vrot.lane.b32.xlu1 %v2905_v52, %s4370_s12  ;;  %v4063_v53 = vpop.f32.mrb[27].mxu0 }
 0xece   :  { %v3133_v54 = vpop.f32.mrb[38].mxu1 }
 0xecf   :  { %v3057_v55 = vpop.f32.mrb[28].mxu0  ;;  %3301 = vrot.lane.b32.xlu0 %v3133_v54, %s4379_s15  ;;  %v4078_v56 = vpop.f32.mrb[39].mxu1 }
 0xed0   :  { %3299 = vrot.lane.b32.xlu1 %v3057_v55, %s4379_s15  ;;  %v4073_v57 = vpop.f32.mrb[29].mxu0 }
 0xed2   :  { %v3285_v58 = vpop.f32.mrb[40].mxu1 }
 0xed3   :  { %v3209_v59 = vpop.f32.mrb[30].mxu0  ;;  %3309 = vrot.lane.b32.xlu0 %v3285_v58, %s4380_s16  ;;  %v4088_v60 = vpop.f32.mrb[41].mxu1 }
 0xed4   :  { %3307 = vrot.lane.b32.xlu1 %v3209_v59, %s4380_s16  ;;  %v4083_v61 = vpop.f32.mrb[31].mxu0 }
 0xf3b   :  { %v3294_v62 = vpop.permute.xlu0 %3293 }
 0xf3c   :  { %v3314_v4 = vsel %vm178_vm2, %v2829_v40, %v3294_v62  ;;  %v4194_v40 = vpack.c.bf16 %v3737_v26, %v3736_v28 }
 0xf3d   :  { %v3292_v63 = vpop.permute.xlu1 %3291 }
 0xf3e   :  { %v3313_v5 = vsel %vm178_vm2, %v2753_v41, %v3292_v63  ;;  %v3739_v41 = vld [vmem:[%s5052_s4 + $0x58] sm:$0xff]  ;;  %4195 = vmatprep.subr.bf16.mxu0 %v4194_v40  ;;  %s4381_s4 = smov [#allocation5]  }
 0xf3f   :  { %v4198_v42 = vpack.c.bf16 %v3739_v41, %v3738_v30 }
 0xf41   :  { %v3302_v2 = vpop.permute.xlu0 %3301 }
 0xf42   :  { %v3300_v3 = vpop.permute.xlu1 %3299  ;;  %v3316_v6 = vsel %vm1523_vm4, %v3314_v4, %v3302_v2 }
 0xf43   :  { %v3315_v10 = vsel %vm1523_vm4, %v3313_v5, %v3300_v3 }
 0xf45   :  { %v3310_v8 = vpop.permute.xlu0 %3309 }
 0xf46   :  { %v3308_v11 = vpop.permute.xlu1 %3307  ;;  %v3318_v12 = vsel %vm1526_vm5, %v3316_v6, %v3310_v8 }
 0xf47   :  { %v3317_v13 = vsel %vm1526_vm5, %v3315_v10, %v3308_v11 }
 0xf48   :  { %4097 = vmatprep.mubr.msk.f32.mxu0 %vm53_vm0, %v3317_v13 }
 0xf49   :  { %4098 = vmatmul.mubr.msk.f32.vlgmr.msra.gmra.mrb[32].mxu0 %vm53_vm0, %v3318_v12 }
 0xf4a   :  { %4197 = vmatpush3.bf16.msra.mxu0 %v4194_v40 }
 0xf4b   :  { %4199 = vmatprep.subr.bf16.mxu0 %v4198_v42 }
 0xf4e   :  { %4201 = vmatpush3.bf16.msra.mxu0 %v4198_v42 }
 0xf4f   :  { %4203 = vmatprep.subr.bf16.mxu0 %v4202_v45 }
 0xf52   :  { %4205 = vmatpush3.bf16.msra.mxu0 %v4202_v45 }
 0xf53   :  { %4207 = vmatprep.subr.bf16.mxu0 %v4206_v48 }
 0xf56   :  { %4209 = vmatpush3.bf16.msra.mxu0 %v4206_v48 }
0x101c   :  { %v4099_v14 = vpop.f32.mrb[32].mxu0 }
0x101d   :  { %v4971_v15 = vadd.f32 %v4099_v14, %v4737_v7  ;;  %v3396_v16 = vpop.f32.mrb[33].mxu0  ;;  %v3728_v7 = vld [vmem:[%s5051_s3 + $0x20] sm:$0xff] }
0x101e   :  { %v4974_v17 = vadd.f32 %v3396_v16, %v4740_v9  ;;  %v3729_v9 = vld [vmem:[%s5051_s3 + $0x28] sm:$0xff] }
0x101f   :  { %v3408_v18 = vmul.f32 %v4971_v15, %v4971_v15  ;;  %v4186_v39 = vpack.c.bf16 %v3729_v9, %v3728_v7 }
0x1020   :  { %v3407_v32 = vmul.f32 %v4974_v17, %v4974_v17 }
0x1021   :  { %v3412_v33 = vsel %vm53_vm0, %v3408_v18, 0.0  ;;  %4187 = vmatprep.subr.bf16.mxu1 %v4186_v39 }
0x1022   :  { %3413 = vadd.xlane.f32.xlu0 %v3412_v33  ;;  %v3409_v1 = vsel %vm53_vm0, %v3407_v32, 0.0  ;;  %4189 = vmatpush3.bf16.msra.mxu1 %v4186_v39 }
0x1023   :  { %3410 = vadd.xlane.f32.xlu1 %v3409_v1  ;;  %4191 = vmatprep.subr.bf16.mxu1 %v4190_v19 }
0x1026   :  { %4193 = vmatpush3.bf16.msra.mxu1 %v4190_v19 }
0x10af   :  { %v3414_v20 = vpop.xlane.xlu0 %3413 }
0x10b0   :  { %v3416_v21 = vmul.f32 0.03125, %v3414_v20  ;;  %v3411_v22 = vpop.xlane.xlu1 %3410 }
0x10b1   :  { %v3415_v23 = vmul.f32 0.03125, %v3411_v22 }
0x10b2   :  { %v3418_v24 = vadd.f32 1e-06, %v3416_v21 }
0x10b3   :  { %v3417_v47 = vadd.f32 1e-06, %v3415_v23 }
0x10b4   :  { %4308 = vrsqrt.f32 %v3418_v24 }
0x10b5   :  { %4310 = vrsqrt.f32 %v3417_v47 }
0x10be   :  { %v4309_v34 = vpop.eup %4308 }
0x10bf   :  { %v4311_v35 = vpop.eup %4310  ;;  %v3422_v37 = vmul.f32 %v4309_v34, %v4971_v15 }
0x10c0   :  { %v3421_v25 = vmul.f32 %v4311_v35, %v4974_v17 }
0x10c1   :  { %v3430_v38 = vmul.f32 %v3727_v36, %v3422_v37 }
0x10c2   :  { %v3429_v29 = vmul.f32 %v3727_v36, %v3421_v25 }
0x10c4   :  { %4108 = vmatprep.mubr.msk.f32.mxu1 %vm53_vm0, %v3429_v29 }
0x10c5   :  { %4109 = vmatmul.mubr.msk.f32.vlgmr.msra.gmra.mrb[42].mxu1 %vm53_vm0, %v3430_v38 }
0x1198   :  { %v4110_v49 = vpop.f32.mrb[42].mxu1 }
0x1199   :  { %3535 = vrot.lane.b32.xlu1 %v4110_v49, %s4378_s28  ;;  %v3508_v50 = vpop.f32.mrb[43].mxu1  ;;  %v3735_v52 = vmul.f32 -1.442695, %v4110_v49 }
0x119a   :  { %3533 = vrot.lane.b32.xlu0 %v3508_v50, %s4378_s28  ;;  %v3734_v51 = vmul.f32 -1.442695, %v3508_v50  ;;  %s3640_s28 = sshll.u32 %s4381_s4, 4  ;;  %s3641_s28 = int_to_ptr.vmem [resolvable:$true] %s3640_s28 }
0x119b   :  { %s4342_s2 = scalar_lea.vmem %s3641_s28, 256  ;;  %p4347_p9 = scmp.lt.s32.totalorder %s3641_s28, %s3641_s28 }
0x119c   :  { %4312 = vpow2.f32 %v3734_v51  ;;  %p4343_p8 = scmp.ne.s32.totalorder %s3641_s28, %s4342_s2  ;;  %p4348_p10 = scmp.lt.s32.totalorder %s4342_s2, %s4342_s2 }
0x119d   :  { %4314 = vpow2.f32 %v3735_v52 }
0x119e   :  { %p4349_p11 = por %p4348_p10, %p4347_p9 }
0x11a0   :  { %p4350_p12 = pnand %p4349_p11, %p4343_p8 }
0x11a6   :  { %v4313_v53 = vpop.eup %4312 }
0x11a7   :  { %v4315_v54 = vpop.eup %4314  ;;  %v3523_v55 = vadd.f32 1.0, %v4313_v53 }
0x11a8   :  { %v3524_v56 = vadd.f32 1.0, %v4315_v54 }
0x11a9   :  { %4316 = vrcp.f32 %v3523_v55 }
0x11aa   :  { %4318 = vrcp.f32 %v3524_v56 }
0x11b3   :  { %v4317_v57 = vpop.eup %4316 }
0x11b4   :  { %v4319_v58 = vpop.eup %4318  ;;  %v3529_v59 = vmul.f32 %v4317_v57, %v3508_v50 }
0x11b5   :  { %v3530_v61 = vmul.f32 %v4319_v58, %v4110_v49 }
0x120b   :  { %v3536_v60 = vpop.permute.xlu1 %3535 }
0x120c   :  { %v3534_v62 = vpop.permute.xlu0 %3533  ;;  %v3540_v2 = vmul.f32 %v3536_v60, %v3530_v61 }
0x120d   :  { %v3539_v63 = vmul.f32 %v3534_v62, %v3529_v59 }
0x120f   :  { %4127 = vmatprep.mubr.msk.f32.mxu0 %vm1757_vm6, %v3539_v63 }
0x1210   :  { %4128 = vmatmul.mubr.msk.f32.vlgmr.msra.gmra.mrb[34].mxu0 %vm1757_vm6, %v3540_v2 }
0x12e3   :  { %v4129_v3 = vpop.f32.mrb[34].mxu0 }
0x12e4   :  { %v3632_v4 = vadd.f32 %v4129_v3, %v4971_v15  ;;  %v3622_v5 = vpop.f32.mrb[35].mxu0 }
0x12e5   :  { %v3631_v6 = vadd.f32 %v3622_v5, %v4974_v17 }
0x12e6   :  { %3634 = vst.msk [vmem:[#allocation5 + $0x8] sm:$0xff] %vm53_vm0, %v3632_v4 }
0x12e7   :  { %3633 = vst.msk [vmem:[#allocation5] sm:$0xff] %vm53_vm0, %v3631_v6 }
0x12e8   :  { %4353 = shalt.err (!%p4350_p12)
}
0x12e9   :  { %s4354_s30 = scalar_lea.hbm %s5055_s7, 256 }
0x12ea   :  { %p4355_p13 = scmp.ne.s32.totalorder %s5055_s7, %s4354_s30  ;;  %p4358_p0 = scmp.lt.u32.totalorder %s4354_s30, %s5055_s7 }
0x12ec   :  { %p4360_p1 = pnand %p4358_p0, %p4355_p13 }
0x12ee   :  { %4363 = shalt.err (!%p4360_p1)
}
0x12ef   :  { %3646 = dma.vmem_to_hbm [thread:$0]  %s3641_s28, 256, %s5055_s7, [#allocation4], %s4369_s11, %s4369_s11, %s4370_s12  }
0x12f0   :  { %4366 = dma.done.wait [#allocation4], 256  }
0x12f1   :  { %4367 = vsyncadd [#allocation4], 4294967040 }
0x12f2   :  { %3650 = vsyncpa [#allocation3], 1 }
0x12f3   :  { %3651 = vsyncpa [#allocation4], 1 }

</bundles_post_ra>
